<compile_context>
chip_gen: v7x
topology: tpu7x:2x2x1
jax: 0.10.0
libtpu: 0.0.40
codegen_flags: <defaults>
</compile_context>

<pallas_src>
import functools

import jax
import jax.numpy as jnp
from jax import lax
from jax.experimental import pallas as pl
from jax.experimental.pallas import tpu as pltpu

NUM_QUERIES = 10                                  # self.q is (1, 10, dim)
Q_PAD = ((NUM_QUERIES + 7) // 8) * 8              # 16: sublane-tile aligned per head
_NEG_INF = -1e30


def _qattn_kernel(x_ref, qt_ref, mt_ref, bp_ref, o_ref,
                  m_sc, l_sc, acc_sc, *, num_heads, q_pad, tn, n_valid):
    """One (batch, n-block) grid step, online softmax over the N axis.

    x_ref : (1, tn, C)     current key/value block (native dtype)
    qt_ref: (H*Qp, C)      scale * q_h @ Wk_h, heads stacked on rows (batch-invariant)
    mt_ref: (H, C, C)      (Wp[:, h_cols] @ Wv[h_rows, :])^T          (batch-invariant)
    bp_ref: (1, C)         proj bias (f32)
    o_ref : (1, 10, C)
    m_sc, l_sc : (H*Qp, 1) f32 online-softmax state
    acc_sc     : (H*Qp, C) f32 un-normalized (attn @ x) accumulator
    """
    nb = pl.program_id(1)
    hq, C = acc_sc.shape

    @pl.when(nb == 0)
    def _init():
        m_sc[...] = jnp.full((hq, 1), -jnp.inf, jnp.float32)
        l_sc[...] = jnp.zeros((hq, 1), jnp.float32)
        acc_sc[...] = jnp.zeros((hq, C), jnp.float32)

    x = x_ref[0]                                                    # (tn, C)

    # All heads' scores in a single MXU pass (contract channel dims, no transpose op).
    s = lax.dot_general(qt_ref[...], x, (((1,), (1,)), ((), ())),
                        preferred_element_type=jnp.float32)         # (H*Qp, tn) f32
    if n_valid % tn != 0:
        # x was zero-padded along N in the wrapper; mask padded key columns.
        col = lax.broadcasted_iota(jnp.int32, s.shape, 1) + nb * tn
        s = jnp.where(col < n_valid, s, jnp.float32(_NEG_INF))

    m_prev = m_sc[...]
    m_new = jnp.maximum(m_prev, jnp.max(s, axis=-1, keepdims=True))
    alpha = jnp.exp(m_prev - m_new)
    p = jnp.exp(s - m_new)                                          # (H*Qp, tn)
    l_sc[...] = alpha * l_sc[...] + jnp.sum(p, axis=-1, keepdims=True)
    acc_sc[...] = alpha * acc_sc[...] + jnp.dot(
        p.astype(x.dtype), x, preferred_element_type=jnp.float32)   # (H*Qp, C)
    m_sc[...] = m_new

    @pl.when(nb == pl.num_programs(1) - 1)
    def _finalize():
        # Accumulator starts as the broadcast proj bias (no separate bias add).
        out = jnp.broadcast_to(bp_ref[...].astype(jnp.float32), (q_pad, C))
        for h in range(num_heads):                    # tiny H, unrolled at trace time
            rows = pl.ds(h * q_pad, q_pad)            # tile-aligned per-head slice
            t_h = acc_sc[rows, :] / l_sc[rows, :]     # exact softmax normalization
            out = out + jnp.dot(t_h.astype(mt_ref.dtype), mt_ref[h],
                                preferred_element_type=jnp.float32)
        o_ref[0] = out[:NUM_QUERIES, :].astype(o_ref.dtype)


def _fold_params(q_param, wk, wv, wp, bp, *, num_heads, scale, dtype):
    """Batch-invariant algebraic folds, computed once outside the kernel."""
    C = wk.shape[0]
    hd = C // num_heads
    # qt[h, q, :] = scale * q[q, h_cols] @ Wk[h_rows, :]
    q3 = q_param.reshape(NUM_QUERIES, num_heads, hd)
    wk3 = wk.reshape(num_heads, hd, C)
    qt = scale * jnp.einsum("qhd,hdc->hqc", q3, wk3)                 # (H, 10, C)
    qt = jnp.pad(qt, ((0, 0), (0, Q_PAD - NUM_QUERIES), (0, 0)))     # pad queries -> Q_PAD
    qt = qt.reshape(num_heads * Q_PAD, C).astype(dtype)              # heads stacked on rows

    # mT[h, c, o] = sum_d Wv[h*hd+d, c] * Wp[o, h*hd+d]
    wv3 = wv.reshape(num_heads, hd, C)
    wp3 = wp.reshape(C, num_heads, hd)
    mt = jnp.einsum("hdc,ohd->hco", wv3, wp3).astype(dtype)          # (H, C, C)

    bp2 = bp.reshape(1, C).astype(jnp.float32)
    return qt, mt, bp2


def _choose_tn(n, c, itemsize):
    """Largest N tile keeping the double-buffered x slab around <= 4 MiB."""
    budget = 4 * 1024 * 1024
    tn = budget // max(1, 2 * c * itemsize)
    tn = int(max(8, min(2048, (tn // 8) * 8)))       # multiple of 8 sublanes
    return n if tn >= n else tn


def query_attention(x, q_param, wk, wv, wp, bp, *, num_heads=2):
    """Pallas implementation of query_Attention.forward.

    x: (B, N, C); q_param: (10, C); wk/wv/wp: (C, C) torch Linear (out, in); bp: (C,)
    returns (B, 10, C)
    """
    B, N, C = x.shape
    assert C % num_heads == 0, "dim must be divisible by num_heads"
    assert q_param.shape == (NUM_QUERIES, C), q_param.shape
    head_dim = C // num_heads
    scale = head_dim ** (-0.5)

    qt, mt, bp2 = _fold_params(q_param, wk, wv, wp, bp,
                               num_heads=num_heads, scale=scale, dtype=x.dtype)

    itemsize = jnp.dtype(x.dtype).itemsize
    tn = _choose_tn(N, C, itemsize)
    n_pad = -(-N // tn) * tn
    if n_pad != N:
        # zero-pad keys to a tn multiple; the kernel masks their scores.
        x = jnp.pad(x, ((0, 0), (0, n_pad - N), (0, 0)))
    n_blocks = n_pad // tn
    hq = num_heads * Q_PAD

    # Realistic VMEM footprint: 2x x-block, 1x qt/mT/bias, 2x out-block, f32 scratch.
    est_bytes = (2 * tn * C * itemsize
                 + hq * C * itemsize
                 + num_heads * C * C * itemsize
                 + C * 4
                 + 2 * NUM_QUERIES * C * itemsize
                 + hq * (C + 2) * 4)
    comp_kwargs = dict(dimension_semantics=("parallel", "arbitrary"))
    if est_bytes > (14 << 20):
        # Only raise above the smallest default scoped limit, sized to need + headroom.
        comp_kwargs["vmem_limit_bytes"] = int(est_bytes * 1.5) + (8 << 20)

    kernel = functools.partial(_qattn_kernel, num_heads=num_heads,
                               q_pad=Q_PAD, tn=tn, n_valid=N)

    def build(weight_kwargs):
        return pl.pallas_call(
            kernel,
            out_shape=jax.ShapeDtypeStruct((B, NUM_QUERIES, C), x.dtype),
            grid_spec=pltpu.PrefetchScalarGridSpec(
                num_scalar_prefetch=0,
                grid=(B, n_blocks),
                in_specs=[
                    pl.BlockSpec((1, tn, C), lambda b, n: (b, n, 0)),                  # x
                    pl.BlockSpec((hq, C), lambda b, n: (0, 0), **weight_kwargs),       # qt
                    pl.BlockSpec((num_heads, C, C), lambda b, n: (0, 0, 0),
                                 **weight_kwargs),                                     # mT
                    pl.BlockSpec((1, C), lambda b, n: (0, 0), **weight_kwargs),        # bias
                ],
                out_specs=pl.BlockSpec((1, NUM_QUERIES, C), lambda b, n: (b, 0, 0)),
                scratch_shapes=[
                    pltpu.VMEM((hq, 1), jnp.float32),       # m (running max)
                    pltpu.VMEM((hq, 1), jnp.float32),       # l (running denom)
                    pltpu.VMEM((hq, C), jnp.float32),       # acc (attn @ x)
                ],
            ),
            compiler_params=pltpu.CompilerParams(**comp_kwargs),
        )

    try:
        # Constant-index-map operands -> single-buffered (halves resident weight VMEM).
        return build(dict(pipeline_mode=pl.Buffered(1)))(x, qt, mt, bp2)
    except Exception:
        # TODO(synk): drop fallback once pl.Buffered(1) is guaranteed on the target jaxlib.
        return build({})(x, qt, mt, bp2)


def _reference(x, q_param, wk, wv, wp, bp, *, num_heads=2):
    """Pure-JAX reference matching the PyTorch forward exactly (dropout p=0)."""
    B, N, C = x.shape
    hd = C // num_heads
    scale = hd ** (-0.5)
    k = (x @ wk.T).reshape(B, N, num_heads, hd).transpose(0, 2, 1, 3)
    v = (x @ wv.T).reshape(B, N, num_heads, hd).transpose(0, 2, 1, 3)
    q = jnp.broadcast_to(q_param[None], (B, NUM_QUERIES, C))
    q = q.reshape(B, NUM_QUERIES, num_heads, hd).transpose(0, 2, 1, 3)
    attn = jnp.einsum("bhqd,bhkd->bhqk", q, k) * scale
    attn = jax.nn.softmax(attn, axis=-1)
    out = jnp.einsum("bhqk,bhkd->bhqd", attn, v)
    out = out.transpose(0, 2, 1, 3).reshape(B, NUM_QUERIES, C)
    return out @ wp.T + bp


if __name__ == "__main__":
    B, N, C = 2, 16, 32
    num_heads = 2

    key = jax.random.PRNGKey(0)
    kx, kk, kv, kp, kb = jax.random.split(key, 5)

    x = jax.random.normal(kx, (B, N, C), dtype=jnp.float32)
    # Deterministic parameter init mirroring the module's __init__ shapes:
    q_param = jnp.ones((NUM_QUERIES, C), dtype=jnp.float32)   # torch.ones((1, 10, dim))
    wk = jax.random.normal(kk, (C, C), dtype=jnp.float32) * 0.05
    wv = jax.random.normal(kv, (C, C), dtype=jnp.float32) * 0.05
    wp = jax.random.normal(kp, (C, C), dtype=jnp.float32) * 0.05
    bp = jax.random.normal(kb, (C,), dtype=jnp.float32) * 0.05

    out = query_attention(x, q_param, wk, wv, wp, bp, num_heads=num_heads)
    out = jax.block_until_ready(out)

    ref = _reference(x, q_param, wk, wv, wp, bp, num_heads=num_heads)
    assert out.shape == (B, NUM_QUERIES, C), out.shape
    max_err = float(jnp.max(jnp.abs(out - ref)))
    assert jnp.allclose(out, ref, atol=5e-3, rtol=5e-3), max_err

    print("KERNEL_OK")
</pallas_src>

<mosaic_0001>
module attributes {stable_mosaic.version = 11 : i64} {
  func.func @_qattn_kernel(%arg0: i32, %arg1: i32, %arg2: memref<1x16x32xf32, #tpu.memory_space<vmem>>, %arg3: memref<32x32xf32, #tpu.memory_space<vmem>>, %arg4: memref<2x32x32xf32, #tpu.memory_space<vmem>>, %arg5: memref<1x32xf32, #tpu.memory_space<vmem>>, %arg6: memref<1x10x32xf32, #tpu.memory_space<vmem>>, %arg7: memref<32x1xf32, #tpu.memory_space<vmem>>, %arg8: memref<32x1xf32, #tpu.memory_space<vmem>>, %arg9: memref<32x32xf32, #tpu.memory_space<vmem>>) attributes {dimension_semantics = [#tpu.dimension_semantics<parallel>, #tpu.dimension_semantics<arbitrary>], iteration_bounds = array<i64: 2, 1>, scalar_prefetch = 0 : i64, scratch_operands = 3 : i64, tpu.core_type = #tpu.core_type<tc>, window_params = [{transform_indices = @transform_0, window_bounds = array<i64: 1, 16, 32>}, {pipeline_mode = #tpu.pipeline_mode<synchronous>, transform_indices = @transform_1, window_bounds = array<i64: 32, 32>}, {pipeline_mode = #tpu.pipeline_mode<synchronous>, transform_indices = @transform_2, window_bounds = array<i64: 2, 32, 32>}, {pipeline_mode = #tpu.pipeline_mode<synchronous>, transform_indices = @transform_3, window_bounds = array<i64: 1, 32>}, {transform_indices = @transform_4, window_bounds = array<i64: 1, 10, 32>}]} {
    %c0_i32 = arith.constant 0 : i32
    %0 = arith.cmpi eq, %arg1, %c0_i32 : i32
    %1 = arith.extui %0 : i1 to i32
    %c0_i32_0 = arith.constant 0 : i32
    %2 = arith.cmpi ne, %1, %c0_i32_0 : i32
    scf.if %2 {
      %cst_22 = arith.constant 0xFF800000 : f32
      %32 = vector.broadcast %cst_22 : f32 to vector<32x1xf32>
      %c0_23 = arith.constant 0 : index
      %c0_24 = arith.constant 0 : index
      %33 = vector.load %arg7[%c0_23, %c0_24] : memref<32x1xf32, #tpu.memory_space<vmem>>, vector<32x1xf32>
      tpu.vector_store %arg7[%c0_23, %c0_24], %32 {strides = array<i32>} : memref<32x1xf32, #tpu.memory_space<vmem>>, vector<32x1xf32>,
      %cst_25 = arith.constant 0.000000e+00 : f32
      %34 = vector.broadcast %cst_25 : f32 to vector<32x1xf32>
      %c0_26 = arith.constant 0 : index
      %c0_27 = arith.constant 0 : index
      %35 = vector.load %arg8[%c0_26, %c0_27] : memref<32x1xf32, #tpu.memory_space<vmem>>, vector<32x1xf32>
      tpu.vector_store %arg8[%c0_26, %c0_27], %34 {strides = array<i32>} : memref<32x1xf32, #tpu.memory_space<vmem>>, vector<32x1xf32>,
      %cst_28 = arith.constant 0.000000e+00 : f32
      %36 = vector.broadcast %cst_28 : f32 to vector<32x32xf32>
      %c0_29 = arith.constant 0 : index
      %c0_30 = arith.constant 0 : index
      %37 = vector.load %arg9[%c0_29, %c0_30] : memref<32x32xf32, #tpu.memory_space<vmem>>, vector<32x32xf32>
      tpu.vector_store %arg9[%c0_29, %c0_30], %36 {strides = array<i32>} : memref<32x32xf32, #tpu.memory_space<vmem>>, vector<32x32xf32>,
    } else {
    }
    %c0 = arith.constant 0 : index
    %c0_1 = arith.constant 0 : index
    %c0_2 = arith.constant 0 : index
    %3 = vector.load %arg2[%c0, %c0_1, %c0_2] : memref<1x16x32xf32, #tpu.memory_space<vmem>>, vector<1x16x32xf32>
    %4 = vector.shape_cast %3 : vector<1x16x32xf32> to vector<16x32xf32>
    %c0_3 = arith.constant 0 : index
    %c0_4 = arith.constant 0 : index
    %5 = vector.load %arg3[%c0_3, %c0_4] : memref<32x32xf32, #tpu.memory_space<vmem>>, vector<32x32xf32>
    %cst = arith.constant dense<0.000000e+00> : vector<32x16xf32>
    %6 = tpu.matmul %5, %4, %cst {dimension_numbers = #tpu.dot_dimension_numbers<[1], [1], [0], [0], [0, 0, 1, 0], [], []>} : vector<32x32xf32>, vector<16x32xf32>, vector<32x16xf32> -> vector<32x16xf32>
    %c0_5 = arith.constant 0 : index
    %c0_6 = arith.constant 0 : index
    %7 = vector.load %arg7[%c0_5, %c0_6] : memref<32x1xf32, #tpu.memory_space<vmem>>, vector<32x1xf32>
    %cst_7 = arith.constant dense<0xFF800000> : vector<32xf32>
    %8 = vector.multi_reduction <maximumf>, %6, %cst_7 [1] : vector<32x16xf32> to vector<32xf32>
    %9 = vector.shape_cast %8 : vector<32xf32> to vector<32x1xf32>
    %10 = arith.maximumf %7, %9 : vector<32x1xf32>
    %11 = arith.subf %7, %10 : vector<32x1xf32>
    %12 = math.exp %11 : vector<32x1xf32>
    %13 = vector.broadcast %10 : vector<32x1xf32> to vector<32x16xf32>
    %14 = arith.subf %6, %13 : vector<32x16xf32>
    %15 = math.exp %14 : vector<32x16xf32>
    %c0_8 = arith.constant 0 : index
    %c0_9 = arith.constant 0 : index
    %16 = vector.load %arg8[%c0_8, %c0_9] : memref<32x1xf32, #tpu.memory_space<vmem>>, vector<32x1xf32>
    %17 = arith.mulf %12, %16 : vector<32x1xf32>
    %cst_10 = arith.constant dense<0.000000e+00> : vector<32xf32>
    %18 = vector.multi_reduction <add>, %15, %cst_10 [1] : vector<32x16xf32> to vector<32xf32>
    %19 = vector.shape_cast %18 : vector<32xf32> to vector<32x1xf32>
    %20 = arith.addf %17, %19 : vector<32x1xf32>
    %c0_11 = arith.constant 0 : index
    %c0_12 = arith.constant 0 : index
    %21 = vector.load %arg8[%c0_11, %c0_12] : memref<32x1xf32, #tpu.memory_space<vmem>>, vector<32x1xf32>
    tpu.vector_store %arg8[%c0_11, %c0_12], %20 {strides = array<i32>} : memref<32x1xf32, #tpu.memory_space<vmem>>, vector<32x1xf32>,
    %c0_13 = arith.constant 0 : index
    %c0_14 = arith.constant 0 : index
    %22 = vector.load %arg9[%c0_13, %c0_14] : memref<32x32xf32, #tpu.memory_space<vmem>>, vector<32x32xf32>
    %23 = vector.broadcast %12 : vector<32x1xf32> to vector<32x32xf32>
    %24 = arith.mulf %23, %22 : vector<32x32xf32>
    %cst_15 = arith.constant dense<0.000000e+00> : vector<32x32xf32>
    %25 = tpu.matmul %15, %4, %cst_15 {dimension_numbers = #tpu.dot_dimension_numbers<[1], [0], [0], [1], [0, 0, 1, 1], [], []>} : vector<32x16xf32>, vector<16x32xf32>, vector<32x32xf32> -> vector<32x32xf32>
    %26 = arith.addf %24, %25 : vector<32x32xf32>
    %c0_16 = arith.constant 0 : index
    %c0_17 = arith.constant 0 : index
    %27 = vector.load %arg9[%c0_16, %c0_17] : memref<32x32xf32, #tpu.memory_space<vmem>>, vector<32x32xf32>
    tpu.vector_store %arg9[%c0_16, %c0_17], %26 {strides = array<i32>} : memref<32x32xf32, #tpu.memory_space<vmem>>, vector<32x32xf32>,
    %c0_18 = arith.constant 0 : index
    %c0_19 = arith.constant 0 : index
    %28 = vector.load %arg7[%c0_18, %c0_19] : memref<32x1xf32, #tpu.memory_space<vmem>>, vector<32x1xf32>
    tpu.vector_store %arg7[%c0_18, %c0_19], %10 {strides = array<i32>} : memref<32x1xf32, #tpu.memory_space<vmem>>, vector<32x1xf32>,
    %c0_i32_20 = arith.constant 0 : i32
    %29 = arith.cmpi eq, %arg1, %c0_i32_20 : i32
    %30 = arith.extui %29 : i1 to i32
    %c0_i32_21 = arith.constant 0 : i32
    %31 = arith.cmpi ne, %30, %c0_i32_21 : i32
    scf.if %31 {
      %c0_22 = arith.constant 0 : index
      %c0_23 = arith.constant 0 : index
      %32 = vector.load %arg5[%c0_22, %c0_23] : memref<1x32xf32, #tpu.memory_space<vmem>>, vector<1x32xf32>
      %33 = vector.shape_cast %32 : vector<1x32xf32> to vector<1x32xf32>
      %34 = vector.broadcast %33 : vector<1x32xf32> to vector<16x32xf32>
      %c0_24 = arith.constant 0 : index
      %c0_25 = arith.constant 0 : index
      %35 = vector.load %arg9[%c0_24, %c0_25] : memref<32x32xf32, #tpu.memory_space<vmem>>, vector<16x32xf32>
      %c0_26 = arith.constant 0 : index
      %c0_27 = arith.constant 0 : index
      %36 = vector.load %arg8[%c0_26, %c0_27] : memref<32x1xf32, #tpu.memory_space<vmem>>, vector<16x1xf32>
      %37 = vector.broadcast %36 : vector<16x1xf32> to vector<16x32xf32>
      %38 = arith.divf %35, %37 : vector<16x32xf32>
      %c0_28 = arith.constant 0 : index
      %c0_29 = arith.constant 0 : index
      %c0_30 = arith.constant 0 : index
      %39 = vector.load %arg4[%c0_28, %c0_29, %c0_30] : memref<2x32x32xf32, #tpu.memory_space<vmem>>, vector<1x32x32xf32>
      %40 = vector.shape_cast %39 : vector<1x32x32xf32> to vector<32x32xf32>
      %cst_31 = arith.constant dense<0.000000e+00> : vector<16x32xf32>
      %41 = tpu.matmul %38, %40, %cst_31 {dimension_numbers = #tpu.dot_dimension_numbers<[1], [0], [0], [1], [0, 0, 1, 1], [], []>} : vector<16x32xf32>, vector<32x32xf32>, vector<16x32xf32> -> vector<16x32xf32>
      %42 = arith.addf %34, %41 : vector<16x32xf32>
      %c16 = arith.constant 16 : index
      %c0_32 = arith.constant 0 : index
      %43 = vector.load %arg9[%c16, %c0_32] : memref<32x32xf32, #tpu.memory_space<vmem>>, vector<16x32xf32>
      %c16_33 = arith.constant 16 : index
      %c0_34 = arith.constant 0 : index
      %44 = vector.load %arg8[%c16_33, %c0_34] : memref<32x1xf32, #tpu.memory_space<vmem>>, vector<16x1xf32>
      %45 = vector.broadcast %44 : vector<16x1xf32> to vector<16x32xf32>
      %46 = arith.divf %43, %45 : vector<16x32xf32>
      %c1 = arith.constant 1 : index
      %c0_35 = arith.constant 0 : index
      %c0_36 = arith.constant 0 : index
      %47 = vector.load %arg4[%c1, %c0_35, %c0_36] : memref<2x32x32xf32, #tpu.memory_space<vmem>>, vector<1x32x32xf32>
      %48 = vector.shape_cast %47 : vector<1x32x32xf32> to vector<32x32xf32>
      %cst_37 = arith.constant dense<0.000000e+00> : vector<16x32xf32>
      %49 = tpu.matmul %46, %48, %cst_37 {dimension_numbers = #tpu.dot_dimension_numbers<[1], [0], [0], [1], [0, 0, 1, 1], [], []>} : vector<16x32xf32>, vector<32x32xf32>, vector<16x32xf32> -> vector<16x32xf32>
      %50 = arith.addf %42, %49 : vector<16x32xf32>
      %51 = vector.extract_strided_slice %50 {offsets = [0, 0], sizes = [10, 32], strides = [1, 1]} : vector<16x32xf32> to vector<10x32xf32>
      %c0_38 = arith.constant 0 : index
      %c0_39 = arith.constant 0 : index
      %c0_40 = arith.constant 0 : index
      %52 = vector.load %arg6[%c0_38, %c0_39, %c0_40] : memref<1x10x32xf32, #tpu.memory_space<vmem>>, vector<1x10x32xf32>
      %53 = vector.shape_cast %52 : vector<1x10x32xf32> to vector<10x32xf32>
      %54 = vector.shape_cast %51 : vector<10x32xf32> to vector<1x10x32xf32>
      tpu.vector_store %arg6[%c0_38, %c0_39, %c0_40], %54 {strides = array<i32>} : memref<1x10x32xf32, #tpu.memory_space<vmem>>, vector<1x10x32xf32>,
    } else {
    }
    return
  }
  func.func @transform_0(%arg0: i32, %arg1: i32) -> (i32, i32, i32) {
    %c0_i32 = arith.constant 0 : i32
    %c0_i32_0 = arith.constant 0 : i32
    return %arg0, %arg1, %c0_i32 : i32, i32, i32
  }
  func.func @transform_1(%arg0: i32, %arg1: i32) -> (i32, i32) {
    %c0_i32 = arith.constant 0 : i32
    %c0_i32_0 = arith.constant 0 : i32
    %c0_i32_1 = arith.constant 0 : i32
    return %c0_i32, %c0_i32_0 : i32, i32
  }
  func.func @transform_2(%arg0: i32, %arg1: i32) -> (i32, i32, i32) {
    %c0_i32 = arith.constant 0 : i32
    %c0_i32_0 = arith.constant 0 : i32
    %c0_i32_1 = arith.constant 0 : i32
    %c0_i32_2 = arith.constant 0 : i32
    return %c0_i32, %c0_i32_0, %c0_i32_1 : i32, i32, i32
  }
  func.func @transform_3(%arg0: i32, %arg1: i32) -> (i32, i32) {
    %c0_i32 = arith.constant 0 : i32
    %c0_i32_0 = arith.constant 0 : i32
    %c0_i32_1 = arith.constant 0 : i32
    return %c0_i32, %c0_i32_0 : i32, i32
  }
  func.func @transform_4(%arg0: i32, %arg1: i32) -> (i32, i32, i32) {
    %c0_i32 = arith.constant 0 : i32
    %c0_i32_0 = arith.constant 0 : i32
    %c0_i32_1 = arith.constant 0 : i32
    return %arg0, %c0_i32, %c0_i32_0 : i32, i32, i32
  }
}

module attributes {stable_mosaic.version = 11 : i64} {
  func.func @_qattn_kernel(%arg0: i32, %arg1: i32, %arg2: memref<1x16x32xf32, #tpu.memory_space<vmem>>, %arg3: memref<32x32xf32, #tpu.memory_space<vmem>>, %arg4: memref<2x32x32xf32, #tpu.memory_space<vmem>>, %arg5: memref<1x32xf32, #tpu.memory_space<vmem>>, %arg6: memref<1x10x32xf32, #tpu.memory_space<vmem>>, %arg7: memref<32x1xf32, #tpu.memory_space<vmem>>, %arg8: memref<32x1xf32, #tpu.memory_space<vmem>>, %arg9: memref<32x32xf32, #tpu.memory_space<vmem>>) attributes {dimension_semantics = [#tpu.dimension_semantics<parallel>, #tpu.dimension_semantics<arbitrary>], iteration_bounds = array<i64: 2, 1>, scalar_prefetch = 0 : i64, scratch_operands = 3 : i64, tpu.core_type = #tpu.core_type<tc>, window_params = [{transform_indices = @transform_0, window_bounds = array<i64: 1, 16, 32>}, {pipeline_mode = #tpu.pipeline_mode<synchronous>, transform_indices = @transform_1, window_bounds = array<i64: 32, 32>}, {pipeline_mode = #tpu.pipeline_mode<synchronous>, transform_indices = @transform_2, window_bounds = array<i64: 2, 32, 32>}, {pipeline_mode = #tpu.pipeline_mode<synchronous>, transform_indices = @transform_3, window_bounds = array<i64: 1, 32>}, {transform_indices = @transform_4, window_bounds = array<i64: 1, 10, 32>}]} {
    %c0_i32 = arith.constant 0 : i32
    %0 = arith.cmpi eq, %arg1, %c0_i32 : i32
    %1 = arith.extui %0 : i1 to i32
    %c0_i32_0 = arith.constant 0 : i32
    %2 = arith.cmpi ne, %1, %c0_i32_0 : i32
    scf.if %2 {
      %cst_22 = arith.constant 0xFF800000 : f32
      %32 = vector.broadcast %cst_22 : f32 to vector<32x1xf32>
      %c0_23 = arith.constant 0 : index
      %c0_24 = arith.constant 0 : index
      %33 = vector.load %arg7[%c0_23, %c0_24] : memref<32x1xf32, #tpu.memory_space<vmem>>, vector<32x1xf32>
      tpu.vector_store %arg7[%c0_23, %c0_24], %32 {strides = array<i32>} : memref<32x1xf32, #tpu.memory_space<vmem>>, vector<32x1xf32>,
      %cst_25 = arith.constant 0.000000e+00 : f32
      %34 = vector.broadcast %cst_25 : f32 to vector<32x1xf32>
      %c0_26 = arith.constant 0 : index
      %c0_27 = arith.constant 0 : index
      %35 = vector.load %arg8[%c0_26, %c0_27] : memref<32x1xf32, #tpu.memory_space<vmem>>, vector<32x1xf32>
      tpu.vector_store %arg8[%c0_26, %c0_27], %34 {strides = array<i32>} : memref<32x1xf32, #tpu.memory_space<vmem>>, vector<32x1xf32>,
      %cst_28 = arith.constant 0.000000e+00 : f32
      %36 = vector.broadcast %cst_28 : f32 to vector<32x32xf32>
      %c0_29 = arith.constant 0 : index
      %c0_30 = arith.constant 0 : index
      %37 = vector.load %arg9[%c0_29, %c0_30] : memref<32x32xf32, #tpu.memory_space<vmem>>, vector<32x32xf32>
      tpu.vector_store %arg9[%c0_29, %c0_30], %36 {strides = array<i32>} : memref<32x32xf32, #tpu.memory_space<vmem>>, vector<32x32xf32>,
    } else {
    }
    %c0 = arith.constant 0 : index
    %c0_1 = arith.constant 0 : index
    %c0_2 = arith.constant 0 : index
    %3 = vector.load %arg2[%c0, %c0_1, %c0_2] : memref<1x16x32xf32, #tpu.memory_space<vmem>>, vector<1x16x32xf32>
    %4 = vector.shape_cast %3 : vector<1x16x32xf32> to vector<16x32xf32>
    %c0_3 = arith.constant 0 : index
    %c0_4 = arith.constant 0 : index
    %5 = vector.load %arg3[%c0_3, %c0_4] : memref<32x32xf32, #tpu.memory_space<vmem>>, vector<32x32xf32>
    %cst = arith.constant dense<0.000000e+00> : vector<32x16xf32>
    %6 = tpu.matmul %5, %4, %cst {dimension_numbers = #tpu.dot_dimension_numbers<[1], [1], [0], [0], [0, 0, 1, 0], [], []>} : vector<32x32xf32>, vector<16x32xf32>, vector<32x16xf32> -> vector<32x16xf32>
    %c0_5 = arith.constant 0 : index
    %c0_6 = arith.constant 0 : index
    %7 = vector.load %arg7[%c0_5, %c0_6] : memref<32x1xf32, #tpu.memory_space<vmem>>, vector<32x1xf32>
    %cst_7 = arith.constant dense<0xFF800000> : vector<32xf32>
    %8 = vector.multi_reduction <maximumf>, %6, %cst_7 [1] : vector<32x16xf32> to vector<32xf32>
    %9 = vector.shape_cast %8 : vector<32xf32> to vector<32x1xf32>
    %10 = arith.maximumf %7, %9 : vector<32x1xf32>
    %11 = arith.subf %7, %10 : vector<32x1xf32>
    %12 = math.exp %11 : vector<32x1xf32>
    %13 = vector.broadcast %10 : vector<32x1xf32> to vector<32x16xf32>
    %14 = arith.subf %6, %13 : vector<32x16xf32>
    %15 = math.exp %14 : vector<32x16xf32>
    %c0_8 = arith.constant 0 : index
    %c0_9 = arith.constant 0 : index
    %16 = vector.load %arg8[%c0_8, %c0_9] : memref<32x1xf32, #tpu.memory_space<vmem>>, vector<32x1xf32>
    %17 = arith.mulf %12, %16 : vector<32x1xf32>
    %cst_10 = arith.constant dense<0.000000e+00> : vector<32xf32>
    %18 = vector.multi_reduction <add>, %15, %cst_10 [1] : vector<32x16xf32> to vector<32xf32>
    %19 = vector.shape_cast %18 : vector<32xf32> to vector<32x1xf32>
    %20 = arith.addf %17, %19 : vector<32x1xf32>
    %c0_11 = arith.constant 0 : index
    %c0_12 = arith.constant 0 : index
    %21 = vector.load %arg8[%c0_11, %c0_12] : memref<32x1xf32, #tpu.memory_space<vmem>>, vector<32x1xf32>
    tpu.vector_store %arg8[%c0_11, %c0_12], %20 {strides = array<i32>} : memref<32x1xf32, #tpu.memory_space<vmem>>, vector<32x1xf32>,
    %c0_13 = arith.constant 0 : index
    %c0_14 = arith.constant 0 : index
    %22 = vector.load %arg9[%c0_13, %c0_14] : memref<32x32xf32, #tpu.memory_space<vmem>>, vector<32x32xf32>
    %23 = vector.broadcast %12 : vector<32x1xf32> to vector<32x32xf32>
    %24 = arith.mulf %23, %22 : vector<32x32xf32>
    %cst_15 = arith.constant dense<0.000000e+00> : vector<32x32xf32>
    %25 = tpu.matmul %15, %4, %cst_15 {dimension_numbers = #tpu.dot_dimension_numbers<[1], [0], [0], [1], [0, 0, 1, 1], [], []>} : vector<32x16xf32>, vector<16x32xf32>, vector<32x32xf32> -> vector<32x32xf32>
    %26 = arith.addf %24, %25 : vector<32x32xf32>
    %c0_16 = arith.constant 0 : index
    %c0_17 = arith.constant 0 : index
    %27 = vector.load %arg9[%c0_16, %c0_17] : memref<32x32xf32, #tpu.memory_space<vmem>>, vector<32x32xf32>
    tpu.vector_store %arg9[%c0_16, %c0_17], %26 {strides = array<i32>} : memref<32x32xf32, #tpu.memory_space<vmem>>, vector<32x32xf32>,
    %c0_18 = arith.constant 0 : index
    %c0_19 = arith.constant 0 : index
    %28 = vector.load %arg7[%c0_18, %c0_19] : memref<32x1xf32, #tpu.memory_space<vmem>>, vector<32x1xf32>
    tpu.vector_store %arg7[%c0_18, %c0_19], %10 {strides = array<i32>} : memref<32x1xf32, #tpu.memory_space<vmem>>, vector<32x1xf32>,
    %c0_i32_20 = arith.constant 0 : i32
    %29 = arith.cmpi eq, %arg1, %c0_i32_20 : i32
    %30 = arith.extui %29 : i1 to i32
    %c0_i32_21 = arith.constant 0 : i32
    %31 = arith.cmpi ne, %30, %c0_i32_21 : i32
    scf.if %31 {
      %c0_22 = arith.constant 0 : index
      %c0_23 = arith.constant 0 : index
      %32 = vector.load %arg5[%c0_22, %c0_23] : memref<1x32xf32, #tpu.memory_space<vmem>>, vector<1x32xf32>
      %33 = vector.shape_cast %32 : vector<1x32xf32> to vector<1x32xf32>
      %34 = vector.broadcast %33 : vector<1x32xf32> to vector<16x32xf32>
      %c0_24 = arith.constant 0 : index
      %c0_25 = arith.constant 0 : index
      %35 = vector.load %arg9[%c0_24, %c0_25] : memref<32x32xf32, #tpu.memory_space<vmem>>, vector<16x32xf32>
      %c0_26 = arith.constant 0 : index
      %c0_27 = arith.constant 0 : index
      %36 = vector.load %arg8[%c0_26, %c0_27] : memref<32x1xf32, #tpu.memory_space<vmem>>, vector<16x1xf32>
      %37 = vector.broadcast %36 : vector<16x1xf32> to vector<16x32xf32>
      %38 = arith.divf %35, %37 : vector<16x32xf32>
      %c0_28 = arith.constant 0 : index
      %c0_29 = arith.constant 0 : index
      %c0_30 = arith.constant 0 : index
      %39 = vector.load %arg4[%c0_28, %c0_29, %c0_30] : memref<2x32x32xf32, #tpu.memory_space<vmem>>, vector<1x32x32xf32>
      %40 = vector.shape_cast %39 : vector<1x32x32xf32> to vector<32x32xf32>
      %cst_31 = arith.constant dense<0.000000e+00> : vector<16x32xf32>
      %41 = tpu.matmul %38, %40, %cst_31 {dimension_numbers = #tpu.dot_dimension_numbers<[1], [0], [0], [1], [0, 0, 1, 1], [], []>} : vector<16x32xf32>, vector<32x32xf32>, vector<16x32xf32> -> vector<16x32xf32>
      %42 = arith.addf %34, %41 : vector<16x32xf32>
      %c16 = arith.constant 16 : index
      %c0_32 = arith.constant 0 : index
      %43 = vector.load %arg9[%c16, %c0_32] : memref<32x32xf32, #tpu.memory_space<vmem>>, vector<16x32xf32>
      %c16_33 = arith.constant 16 : index
      %c0_34 = arith.constant 0 : index
      %44 = vector.load %arg8[%c16_33, %c0_34] : memref<32x1xf32, #tpu.memory_space<vmem>>, vector<16x1xf32>
      %45 = vector.broadcast %44 : vector<16x1xf32> to vector<16x32xf32>
      %46 = arith.divf %43, %45 : vector<16x32xf32>
      %c1 = arith.constant 1 : index
      %c0_35 = arith.constant 0 : index
      %c0_36 = arith.constant 0 : index
      %47 = vector.load %arg4[%c1, %c0_35, %c0_36] : memref<2x32x32xf32, #tpu.memory_space<vmem>>, vector<1x32x32xf32>
      %48 = vector.shape_cast %47 : vector<1x32x32xf32> to vector<32x32xf32>
      %cst_37 = arith.constant dense<0.000000e+00> : vector<16x32xf32>
      %49 = tpu.matmul %46, %48, %cst_37 {dimension_numbers = #tpu.dot_dimension_numbers<[1], [0], [0], [1], [0, 0, 1, 1], [], []>} : vector<16x32xf32>, vector<32x32xf32>, vector<16x32xf32> -> vector<16x32xf32>
      %50 = arith.addf %42, %49 : vector<16x32xf32>
      %51 = vector.extract_strided_slice %50 {offsets = [0, 0], sizes = [10, 32], strides = [1, 1]} : vector<16x32xf32> to vector<10x32xf32>
      %c0_38 = arith.constant 0 : index
      %c0_39 = arith.constant 0 : index
      %c0_40 = arith.constant 0 : index
      %52 = vector.load %arg6[%c0_38, %c0_39, %c0_40] : memref<1x10x32xf32, #tpu.memory_space<vmem>>, vector<1x10x32xf32>
      %53 = vector.shape_cast %52 : vector<1x10x32xf32> to vector<10x32xf32>
      %54 = vector.shape_cast %51 : vector<10x32xf32> to vector<1x10x32xf32>
      tpu.vector_store %arg6[%c0_38, %c0_39, %c0_40], %54 {strides = array<i32>} : memref<1x10x32xf32, #tpu.memory_space<vmem>>, vector<1x10x32xf32>,
    } else {
    }
    return
  }
  func.func @transform_0(%arg0: i32, %arg1: i32) -> (i32, i32, i32) {
    %c0_i32 = arith.constant 0 : i32
    %c0_i32_0 = arith.constant 0 : i32
    return %arg0, %arg1, %c0_i32 : i32, i32, i32
  }
  func.func @transform_1(%arg0: i32, %arg1: i32) -> (i32, i32) {
    %c0_i32 = arith.constant 0 : i32
    %c0_i32_0 = arith.constant 0 : i32
    %c0_i32_1 = arith.constant 0 : i32
    return %c0_i32, %c0_i32_0 : i32, i32
  }
  func.func @transform_2(%arg0: i32, %arg1: i32) -> (i32, i32, i32) {
    %c0_i32 = arith.constant 0 : i32
    %c0_i32_0 = arith.constant 0 : i32
    %c0_i32_1 = arith.constant 0 : i32
    %c0_i32_2 = arith.constant 0 : i32
    return %c0_i32, %c0_i32_0, %c0_i32_1 : i32, i32, i32
  }
  func.func @transform_3(%arg0: i32, %arg1: i32) -> (i32, i32) {
    %c0_i32 = arith.constant 0 : i32
    %c0_i32_0 = arith.constant 0 : i32
    %c0_i32_1 = arith.constant 0 : i32
    return %c0_i32, %c0_i32_0 : i32, i32
  }
  func.func @transform_4(%arg0: i32, %arg1: i32) -> (i32, i32, i32) {
    %c0_i32 = arith.constant 0 : i32
    %c0_i32_0 = arith.constant 0 : i32
    %c0_i32_1 = arith.constant 0 : i32
    return %arg0, %c0_i32, %c0_i32_0 : i32, i32, i32
  }
}

</mosaic_0001>

<bundles_post_ra>
// kernel: tpu_custom_call.1
= control target key start
LH: loop header
LB: loop body
LE: loop exit
PB: predicated region body
PF: predicated region fallthrough
CT: control target
= control target key end

     0   :  { %9 = vsyncpa [#allocation6], 0  ;;  %s1608_s0 = inlined_call_operand.hbm [shape: f32[2,16,32], index: 0, kind: input, shape index: {}]   ;;  %s1609_s1 = inlined_call_operand.hbm [shape: f32[32,32], index: 1, kind: input, shape index: {}]   ;;  %s1610_s2 = inlined_call_operand.hbm [shape: f32[2,32,32], index: 2, kind: input, shape index: {}]   ;;  %s1611_s3 = inlined_call_operand.vmem [shape: f32[1,32], index: 3, kind: input, shape index: {}]   ;;  %s1612_s4 = inlined_call_operand.vmem [shape: f32[2,10,32], index: 4, kind: output, shape index: {}]  }
   0x1   :  { %11 = vsyncpa [#allocation6 + $0x1], 0 }
   0x2   :  { %12 = vsyncpa [#allocation8], 0  ;;  %s1356_s15 = smov 0   ;;  %s1358_s16 = smov 0  }
   0x3   :  { %s1360_s17 = smov 0   ;;  %s1362_s18 = smov 0  }
   0x4   :  { %s1364_s19 = smov 0   ;;  %s1366_s20 = smov 0  }
   0x5 LB: > { %s944_s21 = sadd.s32 4294967295, %s1321_s20   ;;  %p52_p0 = scmp.ne.s32.totalorder %s1305_s16, %s1301_s15  ;;  %s1321_s20 = sphi %s1366_s20, %s18_s20   ;;  %s1317_s19 = sphi %s1364_s19, %s1629_s19   ;;  %s1313_s18 = sphi %s1362_s18, %s1628_s18   ;;  %s1309_s17 = sphi %s1360_s17, %s1627_s17   ;;  %s1305_s16 = sphi %s1358_s16, %s1626_s16   ;;  %s1301_s15 = sphi %s1356_s15, %s1625_s15  }
   0x6   : > { %p1386_p1 = scmp.eq.s32.totalorder %s944_s21, 0  ;;  %p946_p2 = scmp.ge.s32.totalorder %s1321_s20, 1 }
   0x7   : > { %p152_p3 = scmp.lt.s32.totalorder %s1321_s20, 3  ;;  %s1323_s25 = smov [#allocation7]  }
   0x8   : > { %s1617_s22 = scalar_select %p1386_p1, 1, 0 }
   0x9   : > { %p1394_p4 = por %p1386_p1, %p52_p0  ;;  %p1398_p5 = pnand %p946_p2, %p152_p3 }
   0xa   : > { %s164_s26 = sshll.u32 %s1323_s25, 4  ;;  %s1324_s28 = smov [#allocation9]   ;;  %s165_s26 = int_to_ptr.vmem [resolvable:$true] %s164_s26 }
   0xb   : > { %s1618_s23 = scalar_select %p1394_p4, 1, 0 }
   0xc   : > { %s1619_s24 = scalar_select %p1398_p5, 1, 0 }
   0xd   : > { %p1084_p6 = pneg %p1398_p5  ;;  %s177_s29 = sshll.u32 %s1324_s28, 4  ;;  %s1410_s29 = int_to_ptr.vmem [resolvable:$true] %s177_s29 }
   0xe   : > { %s1181_s6 = scalar_lea.hbm %s1609_s1, 512 }
   0xf   : > { %p1406_p7 = pnand %p1084_p6, %p1386_p1  ;;  %p1182_p8 = scmp.ne.s32.totalorder %s1609_s1, %s1181_s6 }
  0x10   : > { %p1188_p12 = scmp.lt.u32.totalorder %s1181_s6, %s1609_s1 }
  0x11   : > { %p1183_p9 = pneg %p1406_p7 }
  0x13   : > { %p1184_p10 = pnand %p1183_p9, %p1182_p8 }
  0x15   : > { %p1185_p11 = pneg %p1184_p10 }
  0x17   : > { %p1190_p13 = pnand %p1188_p12, %p1185_p11 }
  0x19   : > { %1193 = shalt.err (!%p1190_p13)
}
  0x1a   : > { %s1194_s11 = scalar_lea.vmem %s165_s26, 512  ;;  %p1202_p6 = scmp.lt.s32.totalorder %s165_s26, %s165_s26 }
  0x1b   : > { %p1195_p0 = scmp.ne.s32.totalorder %s165_s26, %s1194_s11  ;;  %p1203_p1 = scmp.lt.s32.totalorder %s1194_s11, %s1194_s11 }
  0x1d   : > { %p1197_p2 = pnand %p1195_p0, %p1183_p9  ;;  %p1204_p4 = por %p1203_p1, %p1202_p6 }
  0x1f   : > { %p1198_p3 = pneg %p1197_p2 }
  0x21   : > { %p1205_p5 = pnand %p1204_p4, %p1198_p3 }
  0x23   : > { %1208 = shalt.err (!%p1205_p5)
}
  0x24   : > { %s1325_s12 = smov 128   ;;  %s1326_s13 = smov 8  }
  0x25   : > { %1087 = dma.hbm_to_vmem [thread:$0]  (!%p1406_p7), %s1609_s1, 512, %s165_s26, [#allocation8], %s1325_s12, %s1325_s12, %s1326_s13  }
  0x26   : > { %s1209_s28 = scalar_lea.hbm %s1610_s2, 1024 }
  0x27   : > { %p1210_p1 = scmp.ne.s32.totalorder %s1610_s2, %s1209_s28  ;;  %p1216_p8 = scmp.lt.u32.totalorder %s1209_s28, %s1610_s2 }
  0x29   : > { %p1212_p4 = pnand %p1210_p1, %p1183_p9 }
  0x2b   : > { %p1213_p5 = pneg %p1212_p4 }
  0x2d   : > { %p1218_p10 = pnand %p1216_p8, %p1213_p5 }
  0x2f   : > { %1221 = shalt.err (!%p1218_p10)
}
  0x30   : > { %s1222_s26 = scalar_lea.vmem %s1410_s29, 1024  ;;  %p1230_p0 = scmp.lt.s32.totalorder %s1410_s29, %s1410_s29 }
  0x31   : > { %p1223_p11 = scmp.ne.s32.totalorder %s1410_s29, %s1222_s26  ;;  %p1231_p2 = scmp.lt.s32.totalorder %s1222_s26, %s1222_s26 }
  0x33   : > { %p1225_p12 = pnand %p1223_p11, %p1183_p9  ;;  %p1232_p3 = por %p1231_p2, %p1230_p0 }
  0x35   : > { %p1226_p13 = pneg %p1225_p12 }
  0x37   : > { %p1233_p6 = pnand %p1232_p3, %p1226_p13 }
  0x39   : > { %1236 = shalt.err (!%p1233_p6)
}
  0x3a   : > { %1090 = dma.hbm_to_vmem [thread:$0]  (!%p1406_p7), %s1610_s2, 1024, %s1410_s29, [#allocation8], %s1325_s12, %s1325_s12, %s1326_s13  }
  0x3b   : > { %s30_s10 = sadd.s32 1, %s1317_s19  ;;  %s39_s27 = sadd.s32 1, %s1309_s17 }
  0x3c   : > { %p32_p9 = scmp.ge.s32.totalorder %s30_s10, 2  ;;  %p46_p1 = scmp.ne.s32.totalorder %s1309_s17, %s1305_s16 }
  0x3d   : > { %p47_p4 = scmp.eq.s32.totalorder %s1321_s20, 0  ;;  %p1097_p5 = scmp.lt.s32.totalorder %s1321_s20, 2 }
  0x3e   : > { %s1631_s10 = smov (%p32_p9, %s30_s10), 0  ;;  %s194_s11 = sand.u32 1, %s1309_s17  }
  0x3f   : > { %p48_p8 = por %p47_p4, %p46_p1  ;;  %s34_s14 = ssub.s32 %s1317_s19, %s1631_s10 }
  0x40   : > { %p37_p10 = scmp.eq.s32.totalorder %s34_s14, 0  ;;  %s950_s15 = sshll.u32 %s194_s11, 4 }
  0x41   : > { %s976_s21 = sshll.u32 %s1317_s19, 8  ;;  %s198_s5 = scalar_lea.vmem [#allocation5], %s950_s15 }
  0x42   : > { %s1478_s25 = scalar_select %p37_p10, %s1309_s17, %s39_s27  }
  0x43   : > { %s1483_s30 = scalar_lea.hbm %s1608_s0, %s976_s21  ;;  %s207_s6 = sshll.u32 %s198_s5, 4  ;;  %s1485_s6 = int_to_ptr.vmem [resolvable:$true] %s207_s6 }
  0x44   : > { %p1489_p7 = pnand %p1097_p5, %p48_p8  ;;  %s1493_s26 = scalar_lea.sflag [#allocation6], %s194_s11 }
  0x45   : > { %s1237_s8 = scalar_lea.hbm %s1483_s30, 256  ;;  %s1242_s14 = scalar_lea.hbm %s1608_s0, 512 }
  0x46   : > { %p1238_p11 = scmp.ne.s32.totalorder %s1483_s30, %s1237_s8  ;;  %p1239_p12 = pneg %p1489_p7 }
  0x47   : > { %p1243_p2 = scmp.lt.u32.totalorder %s1483_s30, %s1608_s0  ;;  %p1244_p3 = scmp.lt.u32.totalorder %s1242_s14, %s1237_s8 }
  0x48   : > { %p1240_p13 = pnand %p1239_p12, %p1238_p11  ;;  %p1246_p9 = scmp.lt.u32.totalorder %s1237_s8, %s1483_s30 }
  0x49   : > { %p1245_p6 = por %p1244_p3, %p1243_p2 }
  0x4a   : > { %p1241_p0 = pneg %p1240_p13 }
  0x4b   : > { %p1247_p1 = por %p1246_p9, %p1245_p6 }
  0x4d   : > { %p1248_p4 = pnand %p1247_p1, %p1241_p0 }
  0x4f   : > { %1251 = shalt.err (!%p1248_p4)
}
  0x50   : > { %s1252_s11 = scalar_lea.vmem %s1485_s6, 256  ;;  %s1327_s28 = smov [#allocation5]  }
  0x51   : > { %p1253_p5 = scmp.ne.s32.totalorder %s1485_s6, %s1252_s11  ;;  %s1257_s29 = sshll.u32 %s1327_s28, 4  ;;  %s1258_s29 = int_to_ptr.vmem [resolvable:$false] %s1257_s29 }
  0x52   : > { %s1259_s5 = scalar_lea.vmem %s1258_s29, 512  ;;  %p1260_p11 = scmp.lt.s32.totalorder %s1485_s6, %s1258_s29 }
  0x53   : > { %p1255_p8 = pnand %p1253_p5, %p1239_p12  ;;  %p1261_p13 = scmp.lt.s32.totalorder %s1259_s5, %s1252_s11 }
  0x55   : > { %p1256_p10 = pneg %p1255_p8  ;;  %p1262_p2 = por %p1261_p13, %p1260_p11 }
  0x57   : > { %p1263_p3 = pnand %p1262_p2, %p1256_p10 }
  0x59   : > { %1266 = shalt.err (!%p1263_p3)
}
  0x5a   : > { %1094 = dma.hbm_to_vmem [thread:$0]  (!%p1489_p7), %s1483_s30, 256, %s1485_s6, %s1493_s26, %s1325_s12, %s1325_s12, %s1326_s13  }
  0x5b   : > { %p1622_p12 = scmp.ne.s32.totalorder %s1619_s24, 0 }
  0x5c   : > { %s221_s8 = sand.u32 (!%p1622_p12), 1, %s1305_s16   ;;  %p1623_p0 = scmp.ne.s32.totalorder (!%p1622_p12), %s1618_s23, 0 }
  0x5d   : > { %219 = sbr.rel (%p1622_p12) target bundleno = 1140 (0x474), region = 36  ;;  %s954_s9 = sshll.u32 (!%p1622_p12), %s221_s8, 4 }
  0x5e   : > { %s222_s27 = scalar_lea.sflag (!%p1622_p12), [#allocation6], %s221_s8  ;;  %s225_s14 = scalar_lea.vmem (!%p1622_p12), [#allocation5], %s954_s9 }
  0x64   : > { %1292 = dma.done.wait (%p1623_p0), %s222_s27, 256  }
  0x65   : > { %1294 = vsyncadd (%p1623_p0), %s222_s27, 4294967040  ;;  %p1624_p6 = scmp.ne.s32.totalorder %s1617_s22, 0 }
  0x67   : > { %1296 = dma.done.wait (%p1624_p6), [#allocation8], 1536  }
  0x68   : > { %1298 = vsyncadd (%p1624_p6), [#allocation8], 4294965760  ;;  %vm277_vm0 = vcmask 261120   ;;  %v282_v0 = vld [vmem:[%s225_s14] sm:$0xff]  ;;  %v283_v1 = vld [vmem:[%s225_s14 + $0x8] sm:$0xff]  ;;  %vm268_vm2 = vcmask 7168  }
  0x69   : > { %vm1045_vm1 = vmpackc.low %vm277_vm0, %vm277_vm0  ;;  %v284_v2 = vld [vmem:[#allocation7] sm:$0xff]  ;;  %v1044_v3 = vpack.c.bf16 %v283_v1, %v282_v0  ;;  %v285_v4 = vld [vmem:[#allocation7 + $0x8] sm:$0xff]  ;;  %v1328_v7 = vmov -inf   ;;  %vm396_vm3 = vcmask 130048   ;;  %v1329_v16 = vmov 0   ;;  %p259_p7 = scmp.lt.s32.totalorder %s1313_s18, 1 }
  0x6a   : > { %1006 = vmatprep.mubr.msk.f32.mxu0 %vm277_vm0, %v284_v2  ;;  %v286_v5 = vld [vmem:[#allocation7 + $0x10] sm:$0xff]  ;;  %v287_v6 = vld [vmem:[#allocation7 + $0x18] sm:$0xff]  ;;  %269 = vst.msk [vmem:[#allocation2] sm:$0xff] %vm268_vm2, %v1328_v7  ;;  %270 = vst.msk [vmem:[#allocation2 + $0x8] sm:$0xff] %vm268_vm2, %v1328_v7  ;;  %1155 = vset.pattern.permute.xlu0 %v1329_v16  ;;  %v1330_v17 = vmov 0.0   ;;  %vm845_vm4 = vcmask 254976  }
  0x6b   : > { %1046 = vmatprep.subr.msk.bf16.mxu0 %vm1045_vm1, %v1044_v3  ;;  %1051 = vmatprep.subr.bf16.mxu1 %v1044_v3  ;;  %271 = vst.msk [vmem:[#allocation2 + $0x10] sm:$0xff] %vm268_vm2, %v1328_v7  ;;  %272 = vst.msk [vmem:[#allocation2 + $0x18] sm:$0xff] %vm268_vm2, %v1328_v7  ;;  %s1633_s18 = smov (!%p259_p7, %s1313_s18), 1 }
  0x6c   : > { %1049 = vmatpush3.bf16.xpose.msk.msra.mxu0 %vm1045_vm1, %v1044_v3  ;;  %1053 = vmatpush3.bf16.msra.mxu1 %v1044_v3  ;;  %273 = vst.msk [vmem:[#allocation3] sm:$0xff] %vm268_vm2, %v1330_v17  ;;  %274 = vst.msk [vmem:[#allocation3 + $0x8] sm:$0xff] %vm268_vm2, %v1330_v17  ;;  %s977_s24 = sshll.u32 %s1633_s18, 4 }
  0x6d   : > { %1156 = vset.pattern.permute.xlu1 %v1329_v16  ;;  %275 = vst.msk [vmem:[#allocation3 + $0x10] sm:$0xff] %vm268_vm2, %v1330_v17  ;;  %276 = vst.msk [vmem:[#allocation3 + $0x18] sm:$0xff] %vm268_vm2, %v1330_v17  ;;  %s263_s30 = scalar_lea.vmem %s1612_s4, %s977_s24 }
  0x6e   : > { %278 = vst.msk [vmem:[#allocation4] sm:$0xff] %vm277_vm0, %v1330_v17  ;;  %279 = vst.msk [vmem:[#allocation4 + $0x8] sm:$0xff] %vm277_vm0, %v1330_v17 }
  0x6f   : > { %280 = vst.msk [vmem:[#allocation4 + $0x10] sm:$0xff] %vm277_vm0, %v1330_v17  ;;  %281 = vst.msk [vmem:[#allocation4 + $0x18] sm:$0xff] %vm277_vm0, %v1330_v17 }
  0x71   : > { %v392_v18 = vld [vmem:[#allocation2] sm:$0xff]  ;;  %v393_v21 = vld [vmem:[#allocation2 + $0x8] sm:$0xff] }
  0x72   : > { %v394_v22 = vld [vmem:[#allocation2 + $0x10] sm:$0xff]  ;;  %v395_v28 = vld [vmem:[#allocation2 + $0x18] sm:$0xff] }
  0x73   : > { %1007 = vmatmul.mubr.msk.f32.vlgmr.msra.gmra.mrb[0].mxu0 %vm277_vm0, %v285_v4  ;;  %v457_v62 = vld [vmem:[#allocation3] sm:$0xff]  ;;  %v458_v1 = vld [vmem:[#allocation3 + $0x8] sm:$0xff] }
  0x74   : > { %1009 = vmatprep.mubr.msk.f32.mxu0 %vm277_vm0, %v286_v5  ;;  %v459_v5 = vld [vmem:[#allocation3 + $0x10] sm:$0xff] }
  0x77   : > { %1010 = vmatmul.mubr.msk.f32.gmra.mrb[2].mxu0 %vm277_vm0, %v287_v6 }
 0x146   : > { %v1008_v8 = vpop.f32.mrb[0].mxu0 }
 0x147   : > { %v373_v9 = vpop.f32.mrb[1].mxu0  ;;  %v400_v13 = vsel %vm396_vm3, %v1008_v8, -inf }
 0x148   : > { %v397_v10 = vsel %vm396_vm3, %v373_v9, -inf }
 0x149   : > { %398 = vmax.xlane.f32.xlu0 %v397_v10 }
 0x14a   : > { %v1011_v11 = vpop.f32.mrb[2].mxu0 }
 0x14b   : > { %v383_v12 = vpop.f32.mrb[3].mxu0  ;;  %v406_v15 = vsel %vm396_vm3, %v1011_v11, -inf }
 0x14c   : > { %v403_v14 = vsel %vm396_vm3, %v383_v12, -inf }
 0x14d   : > { %401 = vmax.xlane.f32.xlu0 %v400_v13  ;;  %404 = vmax.xlane.f32.xlu1 %v403_v14 }
 0x151   : > { %407 = vmax.xlane.f32.xlu1 %v406_v15 }
 0x1d6   : > { %v399_v19 = vpop.xlane.xlu0 %398 }
 0x1d7   : > { %v409_v20 = vmax.f32 %v392_v18, %v399_v19  ;;  %v652_v19 = vld [vmem:[#allocation9 + $0x8] sm:$0xff] }
 0x1d9   : > { %v413_v23 = vsub.f32 %v392_v18, %v409_v20  ;;  %619 = vst.msk [vmem:[#allocation2] sm:$0xff] %vm268_vm2, %v409_v20  ;;  %427 = vperm.xlu0 %1155, %v409_v20   ;;  %v651_v18 = vld [vmem:[#allocation9] sm:$0xff] }
 0x1da   : > { %v402_v24 = vpop.xlane.xlu0 %401  ;;  %v405_v25 = vpop.xlane.xlu1 %404  ;;  %v1054_v20 = vpack.c.bf16 %v652_v19, %v651_v18 }
 0x1db   : > { %v410_v26 = vmax.f32 %v393_v21, %v402_v24  ;;  %v411_v27 = vmax.f32 %v394_v22, %v405_v25  ;;  %v417_v55 = vmul.f32 1.442695, %v413_v23  ;;  %v653_v23 = vld [vmem:[#allocation9 + $0x10] sm:$0xff]  ;;  %v654_v25 = vld [vmem:[#allocation9 + $0x18] sm:$0xff] }
 0x1dc   : > { %1055 = vmatprep.subr.bf16.mxu0 %v1054_v20 }
 0x1dd   : > { %v414_v29 = vsub.f32 %v393_v21, %v410_v26  ;;  %620 = vst.msk [vmem:[#allocation2 + $0x8] sm:$0xff] %vm268_vm2, %v410_v26  ;;  %v415_v30 = vsub.f32 %v394_v22, %v411_v27  ;;  %621 = vst.msk [vmem:[#allocation2 + $0x10] sm:$0xff] %vm268_vm2, %v411_v27  ;;  %432 = vperm.xlu1 %1156, %v410_v26   ;;  %1057 = vmatpush3.bf16.msra.mxu0 %v1054_v20  ;;  %v757_v21 = vld [vmem:[#allocation9 + $0x20] sm:$0xff]  ;;  %v758_v22 = vld [vmem:[#allocation9 + $0x28] sm:$0xff] }
 0x1de   : > { %v408_v31 = vpop.xlane.xlu1 %407  ;;  %v1062_v24 = vpack.c.bf16 %v758_v22, %v757_v21  ;;  %v1058_v26 = vpack.c.bf16 %v654_v25, %v653_v23 }
 0x1df   : > { %v412_v32 = vmax.f32 %v395_v28, %v408_v31  ;;  %v419_v53 = vmul.f32 1.442695, %v414_v29  ;;  %v421_v57 = vmul.f32 1.442695, %v415_v30  ;;  %v487_v30 = vld [vmem:[#allocation4 + $0x8] sm:$0xff] }
 0x1e0   : > { %1063 = vmatprep.subr.bf16.mxu1 %v1062_v24  ;;  %1059 = vmatprep.subr.bf16.mxu0 %v1058_v26 }
 0x1e1   : > { %v416_v33 = vsub.f32 %v395_v28, %v412_v32  ;;  %622 = vst.msk [vmem:[#allocation2 + $0x18] sm:$0xff] %vm268_vm2, %v412_v32  ;;  %437 = vperm.xlu1 %1156, %v411_v27   ;;  %v759_v27 = vld [vmem:[#allocation9 + $0x30] sm:$0xff]  ;;  %v760_v28 = vld [vmem:[#allocation9 + $0x38] sm:$0xff]  ;;  %1061 = vmatpush3.bf16.msra.mxu0 %v1058_v26 }
 0x1e2   : > { %v1066_v29 = vpack.c.bf16 %v760_v28, %v759_v27 }
 0x1e3   : > { %v423_v56 = vmul.f32 1.442695, %v416_v33 }
 0x1e5   : > { %442 = vperm.xlu1 %1156, %v412_v32   ;;  %v486_v32 = vld [vmem:[#allocation4] sm:$0xff] }
 0x258   : > { %v428_v34 = vpop.permute.xlu0 %427 }
 0x259   : > { %v445_v35 = vsub.f32 %v373_v9, %v428_v34  ;;  %v460_v9 = vld [vmem:[#allocation3 + $0x18] sm:$0xff] }
 0x25b   : > { %v449_v36 = vmul.f32 1.442695, %v445_v35 }
 0x25c   : > { %v433_v37 = vpop.permute.xlu1 %432 }
 0x25d   : > { %1157 = vpow2.f32 %v449_v36  ;;  %v446_v38 = vsub.f32 %v1008_v8, %v433_v37 }
 0x25f   : > { %v451_v39 = vmul.f32 1.442695, %v446_v38 }
 0x260   : > { %v438_v40 = vpop.permute.xlu1 %437 }
 0x261   : > { %1159 = vpow2.f32 %v451_v39  ;;  %v447_v41 = vsub.f32 %v383_v12, %v438_v40  ;;  %v489_v40 = vld [vmem:[#allocation4 + $0x18] sm:$0xff] }
 0x263   : > { %v453_v42 = vmul.f32 1.442695, %v447_v41 }
 0x264   : > { %v443_v43 = vpop.permute.xlu1 %442 }
 0x265   : > { %1161 = vpow2.f32 %v453_v42  ;;  %v448_v44 = vsub.f32 %v1011_v11, %v443_v43  ;;  %v488_v42 = vld [vmem:[#allocation4 + $0x10] sm:$0xff] }
 0x267   : > { %v1158_v45 = vpop.eup %1157  ;;  %v455_v46 = vmul.f32 1.442695, %v448_v44 }
 0x268   : > { %1016 = vmatprep.mubr.msk.f32.mxu1 %vm396_vm3, %v1158_v45  ;;  %v465_v47 = vsel %vm396_vm3, %v1158_v45, 0.0 }
 0x269   : > { %1163 = vpow2.f32 %v455_v46  ;;  %466 = vadd.xlane.f32.xlu1 %v465_v47 }
 0x26a   : > { %1165 = vpow2.f32 %v419_v53 }
 0x26b   : > { %v1160_v48 = vpop.eup %1159  ;;  %1167 = vpow2.f32 %v417_v55 }
 0x26c   : > { %1017 = vmatmul.mubr.msk.f32.vlgmr.msra.gmra.mrb[0].mxu1 %vm396_vm3, %v1160_v48  ;;  %v468_v49 = vsel %vm396_vm3, %v1160_v48, 0.0  ;;  %1169 = vpow2.f32 %v423_v56 }
 0x26d   : > { %469 = vadd.xlane.f32.xlu0 %v468_v49  ;;  %1171 = vpow2.f32 %v421_v57  ;;  %1065 = vmatpush3.bf16.msra.mxu1 %v1062_v24 }
 0x26e   : > { %1067 = vmatprep.subr.bf16.mxu1 %v1066_v29 }
 0x26f   : > { %v1162_v50 = vpop.eup %1161 }
 0x270   : > { %1019 = vmatprep.mubr.msk.f32.mxu1 %vm396_vm3, %v1162_v50  ;;  %v471_v51 = vsel %vm396_vm3, %v1162_v50, 0.0 }
 0x271   : > { %472 = vadd.xlane.f32.xlu1 %v471_v51  ;;  %1069 = vmatpush3.bf16.msra.mxu1 %v1066_v29 }
 0x273   : > { %v1164_v52 = vpop.eup %1163 }
 0x274   : > { %1020 = vmatmul.mubr.msk.f32.gmra.mrb[2].mxu1 %vm396_vm3, %v1164_v52  ;;  %v474_v54 = vsel %vm396_vm3, %v1164_v52, 0.0  ;;  %v1166_v58 = vpop.eup %1165 }
 0x275   : > { %475 = vadd.xlane.f32.xlu1 %v474_v54  ;;  %v1168_v59 = vpop.eup %1167  ;;  %v462_v3 = vmul.f32 %v1166_v58, %v458_v1 }
 0x276   : > { %v1170_v60 = vpop.eup %1169  ;;  %v461_v63 = vmul.f32 %v1168_v59, %v457_v62 }
 0x277   : > { %v1172_v61 = vpop.eup %1171  ;;  %v464_v11 = vmul.f32 %v1170_v60, %v460_v9 }
 0x278   : > { %v463_v7 = vmul.f32 %v1172_v61, %v459_v5 }
 0x283   : > { %497 = vperm.xlu0 %1155, %v1166_v58  }
 0x286   : > { %492 = vperm.xlu1 %1156, %v1168_v59  }
 0x287   : > { %507 = vperm.xlu0 %1155, %v1170_v60  }
 0x28a   : > { %502 = vperm.xlu1 %1156, %v1172_v61  }
 0x2f6   : > { %v467_v0 = vpop.xlane.xlu1 %466 }
 0x2f7   : > { %v477_v2 = vadd.f32 %v467_v0, %v461_v63 }
 0x2f9   : > { %482 = vst.msk [vmem:[#allocation3] sm:$0xff] %vm268_vm2, %v477_v2 }
 0x2fa   : > { %v470_v4 = vpop.xlane.xlu0 %469 }
 0x2fb   : > { %v478_v6 = vadd.f32 %v470_v4, %v462_v3  ;;  %v969_v3 = vld [vmem:[%s1611_s3] ss:$0 sm:$0xff] }
 0x2fd   : > { %483 = vst.msk [vmem:[#allocation3 + $0x8] sm:$0xff] %vm268_vm2, %v478_v6 }
 0x2fe   : > { %v473_v8 = vpop.xlane.xlu1 %472 }
 0x2ff   : > { %v479_v10 = vadd.f32 %v473_v8, %v463_v7 }
 0x300   : > { %v635_v15 = vld [vmem:[#allocation3] sm:$0xff] }
 0x301   : > { %484 = vst.msk [vmem:[#allocation3 + $0x10] sm:$0xff] %vm268_vm2, %v479_v10 }
 0x302   : > { %v476_v12 = vpop.xlane.xlu1 %475  ;;  %v498_v31 = vpop.permute.xlu0 %497 }
 0x303   : > { %v480_v13 = vadd.f32 %v476_v12, %v464_v11  ;;  %v511_v34 = vmul.f32 %v498_v31, %v487_v30 }
 0x304   : > { %v636_v14 = vld [vmem:[#allocation3 + $0x8] sm:$0xff] }
 0x305   : > { %485 = vst.msk [vmem:[#allocation3 + $0x18] sm:$0xff] %vm268_vm2, %v480_v13  ;;  %644 = vperm.xlu1 %1156, %v636_v14  }
 0x306   : > { %v493_v33 = vpop.permute.xlu1 %492  ;;  %v508_v41 = vpop.permute.xlu0 %507 }
 0x307   : > { %v510_v35 = vmul.f32 %v493_v33, %v486_v32  ;;  %v513_v44 = vmul.f32 %v508_v41, %v489_v40 }
 0x308   : > { %v740_v17 = vld [vmem:[#allocation3 + $0x10] sm:$0xff] }
 0x309   : > { %639 = vperm.xlu1 %1156, %v635_v15  }
 0x30a   : > { %v503_v43 = vpop.permute.xlu1 %502 }
 0x30b   : > { %v512_v45 = vmul.f32 %v503_v43, %v488_v42 }
 0x30c   : > { %v741_v16 = vld [vmem:[#allocation3 + $0x18] sm:$0xff] }
 0x30d   : > { %749 = vperm.xlu0 %1155, %v741_v16   ;;  %744 = vperm.xlu1 %1156, %v740_v17  }
 0x33f   : > { %v1018_v36 = vpop.f32.mrb[0].mxu1 }
 0x340   : > { %v612_v37 = vadd.f32 %v1018_v36, %v511_v34  ;;  %v592_v38 = vpop.f32.mrb[1].mxu1 }
 0x341   : > { %v611_v39 = vadd.f32 %v592_v38, %v510_v35 }
 0x342   : > { %616 = vst.msk [vmem:[#allocation4 + $0x8] sm:$0xff] %vm277_vm0, %v612_v37 }
 0x343   : > { %615 = vst.msk [vmem:[#allocation4] sm:$0xff] %vm277_vm0, %v611_v39 }
 0x347   : > { %v1021_v46 = vpop.f32.mrb[2].mxu1 }
 0x348   : > { %v614_v47 = vadd.f32 %v1021_v46, %v513_v44  ;;  %v602_v48 = vpop.f32.mrb[3].mxu1 }
 0x349   : > { %v613_v49 = vadd.f32 %v602_v48, %v512_v45  ;;  %v634_v57 = vld [vmem:[#allocation4 + $0x8] sm:$0xff] }
 0x34a   : > { %618 = vst.msk [vmem:[#allocation4 + $0x18] sm:$0xff] %vm277_vm0, %v614_v47  ;;  %v633_v56 = vld [vmem:[#allocation4] sm:$0xff] }
 0x34b   : > { %617 = vst.msk [vmem:[#allocation4 + $0x10] sm:$0xff] %vm277_vm0, %v613_v49 }
 0x351   : > { %v739_v61 = vld [vmem:[#allocation4 + $0x18] sm:$0xff] }
 0x352   : > { %v738_v0 = vld [vmem:[#allocation4 + $0x10] sm:$0xff] }
 0x384   : > { %v645_v50 = vpop.permute.xlu1 %644 }
 0x385   : > { %1173 = vrcp.f32 %v645_v50 }
 0x388   : > { %v640_v51 = vpop.permute.xlu1 %639 }
 0x389   : > { %1175 = vrcp.f32 %v640_v51 }
 0x38c   : > { %v750_v52 = vpop.permute.xlu0 %749  ;;  %v745_v53 = vpop.permute.xlu1 %744 }
 0x38d   : > { %1177 = vrcp.f32 %v750_v52 }
 0x38e   : > { %1179 = vrcp.f32 %v745_v53 }
 0x38f   : > { %v1174_v54 = vpop.eup %1173 }
 0x390   : > { %v650_v59 = vmul.f32 %v1174_v54, %v634_v57 }
 0x393   : > { %v1176_v55 = vpop.eup %1175 }
 0x394   : > { %v648_v58 = vmul.f32 %v1176_v55, %v633_v56 }
 0x396   : > { %1030 = vmatprep.mubr.msk.f32.mxu0 %vm277_vm0, %v648_v58 }
 0x397   : > { %v1178_v60 = vpop.eup %1177  ;;  %1031 = vmatmul.mubr.msk.f32.vlgmr.msra.gmra.mrb[4].mxu0 %vm277_vm0, %v650_v59 }
 0x398   : > { %v1180_v62 = vpop.eup %1179  ;;  %v755_v63 = vmul.f32 %v1178_v60, %v739_v61 }
 0x399   : > { %v753_v1 = vmul.f32 %v1180_v62, %v738_v0 }
 0x39b   : > { %1041 = vmatprep.mubr.msk.f32.mxu1 %vm277_vm0, %v753_v1 }
 0x39c   : > { %1042 = vmatmul.mubr.msk.f32.vlgmr.msra.gmra.mrb[4].mxu1 %vm277_vm0, %v755_v63 }
 0x46a   : > { %v1032_v2 = vpop.f32.mrb[4].mxu0 }
 0x46b   : > { %v727_v4 = vpop.f32.mrb[5].mxu0  ;;  %v737_v5 = vadd.f32 %v1032_v2, %v969_v3 }
 0x46c   : > { %v736_v6 = vadd.f32 %v969_v3, %v727_v4 }
 0x46f   : > { %v1043_v7 = vpop.f32.mrb[4].mxu1 }
 0x470   : > { %v843_v8 = vadd.f32 %v1043_v7, %v737_v5  ;;  %v833_v9 = vpop.f32.mrb[5].mxu1 }
 0x471   : > { %v842_v10 = vadd.f32 %v833_v9, %v736_v6 }
 0x472   : > { %846 = vst.msk [vmem:[%s263_s30 + $0x8] sm:$0x3] %vm845_vm4, %v843_v8 }
 0x473   : > { %844 = vst.msk [vmem:[%s263_s30] sm:$0xff] %vm277_vm0, %v842_v10 }
 0x474 PF: > { %s18_s20 = sadd.s32 1, %s1321_s20   ;;  %s1625_s15 = smov %s1305_s16 }
 0x475   : > { %p15_p9 = scmp.ge.s32.totalorder %s18_s20, 4   ;;  %s1626_s16 = smov %s1309_s17 }
 0x476   : > { %s1627_s17 = smov %s1478_s25  ;;  %s1628_s18 = smov %s1317_s19 }
 0x477   : > { %s1629_s19 = smov %s1631_s10  ;;  %17 = sbr.rel (!%p15_p9) target bundleno = 5 (0x5), region = 93 }
 0x47e   :  { %868 = vsyncpa [#allocation6], 1 }
 0x47f   :  { %870 = vsyncpa [#allocation6 + $0x1], 1 }
 0x480   :  { %871 = vsyncpa [#allocation8], 1 }

// kernel: tpu_custom_call.1
= control target key start
LH: loop header
LB: loop body
LE: loop exit
PB: predicated region body
PF: predicated region fallthrough
CT: control target
= control target key end

     0   :  { %9 = vsyncpa [#allocation6], 0  ;;  %s1608_s0 = inlined_call_operand.hbm [shape: f32[2,16,32], index: 0, kind: input, shape index: {}]   ;;  %s1609_s1 = inlined_call_operand.hbm [shape: f32[32,32], index: 1, kind: input, shape index: {}]   ;;  %s1610_s2 = inlined_call_operand.hbm [shape: f32[2,32,32], index: 2, kind: input, shape index: {}]   ;;  %s1611_s3 = inlined_call_operand.vmem [shape: f32[1,32], index: 3, kind: input, shape index: {}]   ;;  %s1612_s4 = inlined_call_operand.vmem [shape: f32[2,10,32], index: 4, kind: output, shape index: {}]  }
   0x1   :  { %11 = vsyncpa [#allocation6 + $0x1], 0 }
   0x2   :  { %12 = vsyncpa [#allocation8], 0  ;;  %s1356_s15 = smov 0   ;;  %s1358_s16 = smov 0  }
   0x3   :  { %s1360_s17 = smov 0   ;;  %s1362_s18 = smov 0  }
   0x4   :  { %s1364_s19 = smov 0   ;;  %s1366_s20 = smov 0  }
   0x5 LB: > { %s944_s21 = sadd.s32 4294967295, %s1321_s20   ;;  %p52_p0 = scmp.ne.s32.totalorder %s1305_s16, %s1301_s15  ;;  %s1321_s20 = sphi %s1366_s20, %s18_s20   ;;  %s1317_s19 = sphi %s1364_s19, %s1629_s19   ;;  %s1313_s18 = sphi %s1362_s18, %s1628_s18   ;;  %s1309_s17 = sphi %s1360_s17, %s1627_s17   ;;  %s1305_s16 = sphi %s1358_s16, %s1626_s16   ;;  %s1301_s15 = sphi %s1356_s15, %s1625_s15  }
   0x6   : > { %p1386_p1 = scmp.eq.s32.totalorder %s944_s21, 0  ;;  %p946_p2 = scmp.ge.s32.totalorder %s1321_s20, 1 }
   0x7   : > { %p152_p3 = scmp.lt.s32.totalorder %s1321_s20, 3  ;;  %s1323_s25 = smov [#allocation7]  }
   0x8   : > { %s1617_s22 = scalar_select %p1386_p1, 1, 0 }
   0x9   : > { %p1394_p4 = por %p1386_p1, %p52_p0  ;;  %p1398_p5 = pnand %p946_p2, %p152_p3 }
   0xa   : > { %s164_s26 = sshll.u32 %s1323_s25, 4  ;;  %s1324_s28 = smov [#allocation9]   ;;  %s165_s26 = int_to_ptr.vmem [resolvable:$true] %s164_s26 }
   0xb   : > { %s1618_s23 = scalar_select %p1394_p4, 1, 0 }
   0xc   : > { %s1619_s24 = scalar_select %p1398_p5, 1, 0 }
   0xd   : > { %p1084_p6 = pneg %p1398_p5  ;;  %s177_s29 = sshll.u32 %s1324_s28, 4  ;;  %s1410_s29 = int_to_ptr.vmem [resolvable:$true] %s177_s29 }
   0xe   : > { %s1181_s6 = scalar_lea.hbm %s1609_s1, 512 }
   0xf   : > { %p1406_p7 = pnand %p1084_p6, %p1386_p1  ;;  %p1182_p8 = scmp.ne.s32.totalorder %s1609_s1, %s1181_s6 }
  0x10   : > { %p1188_p12 = scmp.lt.u32.totalorder %s1181_s6, %s1609_s1 }
  0x11   : > { %p1183_p9 = pneg %p1406_p7 }
  0x13   : > { %p1184_p10 = pnand %p1183_p9, %p1182_p8 }
  0x15   : > { %p1185_p11 = pneg %p1184_p10 }
  0x17   : > { %p1190_p13 = pnand %p1188_p12, %p1185_p11 }
  0x19   : > { %1193 = shalt.err (!%p1190_p13)
}
  0x1a   : > { %s1194_s11 = scalar_lea.vmem %s165_s26, 512  ;;  %p1202_p6 = scmp.lt.s32.totalorder %s165_s26, %s165_s26 }
  0x1b   : > { %p1195_p0 = scmp.ne.s32.totalorder %s165_s26, %s1194_s11  ;;  %p1203_p1 = scmp.lt.s32.totalorder %s1194_s11, %s1194_s11 }
  0x1d   : > { %p1197_p2 = pnand %p1195_p0, %p1183_p9  ;;  %p1204_p4 = por %p1203_p1, %p1202_p6 }
  0x1f   : > { %p1198_p3 = pneg %p1197_p2 }
  0x21   : > { %p1205_p5 = pnand %p1204_p4, %p1198_p3 }
  0x23   : > { %1208 = shalt.err (!%p1205_p5)
}
  0x24   : > { %s1325_s12 = smov 128   ;;  %s1326_s13 = smov 8  }
  0x25   : > { %1087 = dma.hbm_to_vmem [thread:$0]  (!%p1406_p7), %s1609_s1, 512, %s165_s26, [#allocation8], %s1325_s12, %s1325_s12, %s1326_s13  }
  0x26   : > { %s1209_s28 = scalar_lea.hbm %s1610_s2, 1024 }
  0x27   : > { %p1210_p1 = scmp.ne.s32.totalorder %s1610_s2, %s1209_s28  ;;  %p1216_p8 = scmp.lt.u32.totalorder %s1209_s28, %s1610_s2 }
  0x29   : > { %p1212_p4 = pnand %p1210_p1, %p1183_p9 }
  0x2b   : > { %p1213_p5 = pneg %p1212_p4 }
  0x2d   : > { %p1218_p10 = pnand %p1216_p8, %p1213_p5 }
  0x2f   : > { %1221 = shalt.err (!%p1218_p10)
}
  0x30   : > { %s1222_s26 = scalar_lea.vmem %s1410_s29, 1024  ;;  %p1230_p0 = scmp.lt.s32.totalorder %s1410_s29, %s1410_s29 }
  0x31   : > { %p1223_p11 = scmp.ne.s32.totalorder %s1410_s29, %s1222_s26  ;;  %p1231_p2 = scmp.lt.s32.totalorder %s1222_s26, %s1222_s26 }
  0x33   : > { %p1225_p12 = pnand %p1223_p11, %p1183_p9  ;;  %p1232_p3 = por %p1231_p2, %p1230_p0 }
  0x35   : > { %p1226_p13 = pneg %p1225_p12 }
  0x37   : > { %p1233_p6 = pnand %p1232_p3, %p1226_p13 }
  0x39   : > { %1236 = shalt.err (!%p1233_p6)
}
  0x3a   : > { %1090 = dma.hbm_to_vmem [thread:$0]  (!%p1406_p7), %s1610_s2, 1024, %s1410_s29, [#allocation8], %s1325_s12, %s1325_s12, %s1326_s13  }
  0x3b   : > { %s30_s10 = sadd.s32 1, %s1317_s19  ;;  %s39_s27 = sadd.s32 1, %s1309_s17 }
  0x3c   : > { %p32_p9 = scmp.ge.s32.totalorder %s30_s10, 2  ;;  %p46_p1 = scmp.ne.s32.totalorder %s1309_s17, %s1305_s16 }
  0x3d   : > { %p47_p4 = scmp.eq.s32.totalorder %s1321_s20, 0  ;;  %p1097_p5 = scmp.lt.s32.totalorder %s1321_s20, 2 }
  0x3e   : > { %s1631_s10 = smov (%p32_p9, %s30_s10), 0  ;;  %s194_s11 = sand.u32 1, %s1309_s17  }
  0x3f   : > { %p48_p8 = por %p47_p4, %p46_p1  ;;  %s34_s14 = ssub.s32 %s1317_s19, %s1631_s10 }
  0x40   : > { %p37_p10 = scmp.eq.s32.totalorder %s34_s14, 0  ;;  %s950_s15 = sshll.u32 %s194_s11, 4 }
  0x41   : > { %s976_s21 = sshll.u32 %s1317_s19, 8  ;;  %s198_s5 = scalar_lea.vmem [#allocation5], %s950_s15 }
  0x42   : > { %s1478_s25 = scalar_select %p37_p10, %s1309_s17, %s39_s27  }
  0x43   : > { %s1483_s30 = scalar_lea.hbm %s1608_s0, %s976_s21  ;;  %s207_s6 = sshll.u32 %s198_s5, 4  ;;  %s1485_s6 = int_to_ptr.vmem [resolvable:$true] %s207_s6 }
  0x44   : > { %p1489_p7 = pnand %p1097_p5, %p48_p8  ;;  %s1493_s26 = scalar_lea.sflag [#allocation6], %s194_s11 }
  0x45   : > { %s1237_s8 = scalar_lea.hbm %s1483_s30, 256  ;;  %s1242_s14 = scalar_lea.hbm %s1608_s0, 512 }
  0x46   : > { %p1238_p11 = scmp.ne.s32.totalorder %s1483_s30, %s1237_s8  ;;  %p1239_p12 = pneg %p1489_p7 }
  0x47   : > { %p1243_p2 = scmp.lt.u32.totalorder %s1483_s30, %s1608_s0  ;;  %p1244_p3 = scmp.lt.u32.totalorder %s1242_s14, %s1237_s8 }
  0x48   : > { %p1240_p13 = pnand %p1239_p12, %p1238_p11  ;;  %p1246_p9 = scmp.lt.u32.totalorder %s1237_s8, %s1483_s30 }
  0x49   : > { %p1245_p6 = por %p1244_p3, %p1243_p2 }
  0x4a   : > { %p1241_p0 = pneg %p1240_p13 }
  0x4b   : > { %p1247_p1 = por %p1246_p9, %p1245_p6 }
  0x4d   : > { %p1248_p4 = pnand %p1247_p1, %p1241_p0 }
  0x4f   : > { %1251 = shalt.err (!%p1248_p4)
}
  0x50   : > { %s1252_s11 = scalar_lea.vmem %s1485_s6, 256  ;;  %s1327_s28 = smov [#allocation5]  }
  0x51   : > { %p1253_p5 = scmp.ne.s32.totalorder %s1485_s6, %s1252_s11  ;;  %s1257_s29 = sshll.u32 %s1327_s28, 4  ;;  %s1258_s29 = int_to_ptr.vmem [resolvable:$false] %s1257_s29 }
  0x52   : > { %s1259_s5 = scalar_lea.vmem %s1258_s29, 512  ;;  %p1260_p11 = scmp.lt.s32.totalorder %s1485_s6, %s1258_s29 }
  0x53   : > { %p1255_p8 = pnand %p1253_p5, %p1239_p12  ;;  %p1261_p13 = scmp.lt.s32.totalorder %s1259_s5, %s1252_s11 }
  0x55   : > { %p1256_p10 = pneg %p1255_p8  ;;  %p1262_p2 = por %p1261_p13, %p1260_p11 }
  0x57   : > { %p1263_p3 = pnand %p1262_p2, %p1256_p10 }
  0x59   : > { %1266 = shalt.err (!%p1263_p3)
}
  0x5a   : > { %1094 = dma.hbm_to_vmem [thread:$0]  (!%p1489_p7), %s1483_s30, 256, %s1485_s6, %s1493_s26, %s1325_s12, %s1325_s12, %s1326_s13  }
  0x5b   : > { %p1622_p12 = scmp.ne.s32.totalorder %s1619_s24, 0 }
  0x5c   : > { %s221_s8 = sand.u32 (!%p1622_p12), 1, %s1305_s16   ;;  %p1623_p0 = scmp.ne.s32.totalorder (!%p1622_p12), %s1618_s23, 0 }
  0x5d   : > { %219 = sbr.rel (%p1622_p12) target bundleno = 1140 (0x474), region = 36  ;;  %s954_s9 = sshll.u32 (!%p1622_p12), %s221_s8, 4 }
  0x5e   : > { %s222_s27 = scalar_lea.sflag (!%p1622_p12), [#allocation6], %s221_s8  ;;  %s225_s14 = scalar_lea.vmem (!%p1622_p12), [#allocation5], %s954_s9 }
  0x64   : > { %1292 = dma.done.wait (%p1623_p0), %s222_s27, 256  }
  0x65   : > { %1294 = vsyncadd (%p1623_p0), %s222_s27, 4294967040  ;;  %p1624_p6 = scmp.ne.s32.totalorder %s1617_s22, 0 }
  0x67   : > { %1296 = dma.done.wait (%p1624_p6), [#allocation8], 1536  }
  0x68   : > { %1298 = vsyncadd (%p1624_p6), [#allocation8], 4294965760  ;;  %vm277_vm0 = vcmask 261120   ;;  %v282_v0 = vld [vmem:[%s225_s14] sm:$0xff]  ;;  %v283_v1 = vld [vmem:[%s225_s14 + $0x8] sm:$0xff]  ;;  %vm268_vm2 = vcmask 7168  }
  0x69   : > { %vm1045_vm1 = vmpackc.low %vm277_vm0, %vm277_vm0  ;;  %v284_v2 = vld [vmem:[#allocation7] sm:$0xff]  ;;  %v1044_v3 = vpack.c.bf16 %v283_v1, %v282_v0  ;;  %v285_v4 = vld [vmem:[#allocation7 + $0x8] sm:$0xff]  ;;  %v1328_v7 = vmov -inf   ;;  %vm396_vm3 = vcmask 130048   ;;  %v1329_v16 = vmov 0   ;;  %p259_p7 = scmp.lt.s32.totalorder %s1313_s18, 1 }
  0x6a   : > { %1006 = vmatprep.mubr.msk.f32.mxu0 %vm277_vm0, %v284_v2  ;;  %v286_v5 = vld [vmem:[#allocation7 + $0x10] sm:$0xff]  ;;  %v287_v6 = vld [vmem:[#allocation7 + $0x18] sm:$0xff]  ;;  %269 = vst.msk [vmem:[#allocation2] sm:$0xff] %vm268_vm2, %v1328_v7  ;;  %270 = vst.msk [vmem:[#allocation2 + $0x8] sm:$0xff] %vm268_vm2, %v1328_v7  ;;  %1155 = vset.pattern.permute.xlu0 %v1329_v16  ;;  %v1330_v17 = vmov 0.0   ;;  %vm845_vm4 = vcmask 254976  }
  0x6b   : > { %1046 = vmatprep.subr.msk.bf16.mxu0 %vm1045_vm1, %v1044_v3  ;;  %1051 = vmatprep.subr.bf16.mxu1 %v1044_v3  ;;  %271 = vst.msk [vmem:[#allocation2 + $0x10] sm:$0xff] %vm268_vm2, %v1328_v7  ;;  %272 = vst.msk [vmem:[#allocation2 + $0x18] sm:$0xff] %vm268_vm2, %v1328_v7  ;;  %s1633_s18 = smov (!%p259_p7, %s1313_s18), 1 }
  0x6c   : > { %1049 = vmatpush3.bf16.xpose.msk.msra.mxu0 %vm1045_vm1, %v1044_v3  ;;  %1053 = vmatpush3.bf16.msra.mxu1 %v1044_v3  ;;  %273 = vst.msk [vmem:[#allocation3] sm:$0xff] %vm268_vm2, %v1330_v17  ;;  %274 = vst.msk [vmem:[#allocation3 + $0x8] sm:$0xff] %vm268_vm2, %v1330_v17  ;;  %s977_s24 = sshll.u32 %s1633_s18, 4 }
  0x6d   : > { %1156 = vset.pattern.permute.xlu1 %v1329_v16  ;;  %275 = vst.msk [vmem:[#allocation3 + $0x10] sm:$0xff] %vm268_vm2, %v1330_v17  ;;  %276 = vst.msk [vmem:[#allocation3 + $0x18] sm:$0xff] %vm268_vm2, %v1330_v17  ;;  %s263_s30 = scalar_lea.vmem %s1612_s4, %s977_s24 }
  0x6e   : > { %278 = vst.msk [vmem:[#allocation4] sm:$0xff] %vm277_vm0, %v1330_v17  ;;  %279 = vst.msk [vmem:[#allocation4 + $0x8] sm:$0xff] %vm277_vm0, %v1330_v17 }
  0x6f   : > { %280 = vst.msk [vmem:[#allocation4 + $0x10] sm:$0xff] %vm277_vm0, %v1330_v17  ;;  %281 = vst.msk [vmem:[#allocation4 + $0x18] sm:$0xff] %vm277_vm0, %v1330_v17 }
  0x71   : > { %v392_v18 = vld [vmem:[#allocation2] sm:$0xff]  ;;  %v393_v21 = vld [vmem:[#allocation2 + $0x8] sm:$0xff] }
  0x72   : > { %v394_v22 = vld [vmem:[#allocation2 + $0x10] sm:$0xff]  ;;  %v395_v28 = vld [vmem:[#allocation2 + $0x18] sm:$0xff] }
  0x73   : > { %1007 = vmatmul.mubr.msk.f32.vlgmr.msra.gmra.mrb[0].mxu0 %vm277_vm0, %v285_v4  ;;  %v457_v62 = vld [vmem:[#allocation3] sm:$0xff]  ;;  %v458_v1 = vld [vmem:[#allocation3 + $0x8] sm:$0xff] }
  0x74   : > { %1009 = vmatprep.mubr.msk.f32.mxu0 %vm277_vm0, %v286_v5  ;;  %v459_v5 = vld [vmem:[#allocation3 + $0x10] sm:$0xff] }
  0x77   : > { %1010 = vmatmul.mubr.msk.f32.gmra.mrb[2].mxu0 %vm277_vm0, %v287_v6 }
 0x146   : > { %v1008_v8 = vpop.f32.mrb[0].mxu0 }
 0x147   : > { %v373_v9 = vpop.f32.mrb[1].mxu0  ;;  %v400_v13 = vsel %vm396_vm3, %v1008_v8, -inf }
 0x148   : > { %v397_v10 = vsel %vm396_vm3, %v373_v9, -inf }
 0x149   : > { %398 = vmax.xlane.f32.xlu0 %v397_v10 }
 0x14a   : > { %v1011_v11 = vpop.f32.mrb[2].mxu0 }
 0x14b   : > { %v383_v12 = vpop.f32.mrb[3].mxu0  ;;  %v406_v15 = vsel %vm396_vm3, %v1011_v11, -inf }
 0x14c   : > { %v403_v14 = vsel %vm396_vm3, %v383_v12, -inf }
 0x14d   : > { %401 = vmax.xlane.f32.xlu0 %v400_v13  ;;  %404 = vmax.xlane.f32.xlu1 %v403_v14 }
 0x151   : > { %407 = vmax.xlane.f32.xlu1 %v406_v15 }
 0x1d6   : > { %v399_v19 = vpop.xlane.xlu0 %398 }
 0x1d7   : > { %v409_v20 = vmax.f32 %v392_v18, %v399_v19  ;;  %v652_v19 = vld [vmem:[#allocation9 + $0x8] sm:$0xff] }
 0x1d9   : > { %v413_v23 = vsub.f32 %v392_v18, %v409_v20  ;;  %619 = vst.msk [vmem:[#allocation2] sm:$0xff] %vm268_vm2, %v409_v20  ;;  %427 = vperm.xlu0 %1155, %v409_v20   ;;  %v651_v18 = vld [vmem:[#allocation9] sm:$0xff] }
 0x1da   : > { %v402_v24 = vpop.xlane.xlu0 %401  ;;  %v405_v25 = vpop.xlane.xlu1 %404  ;;  %v1054_v20 = vpack.c.bf16 %v652_v19, %v651_v18 }
 0x1db   : > { %v410_v26 = vmax.f32 %v393_v21, %v402_v24  ;;  %v411_v27 = vmax.f32 %v394_v22, %v405_v25  ;;  %v417_v55 = vmul.f32 1.442695, %v413_v23  ;;  %v653_v23 = vld [vmem:[#allocation9 + $0x10] sm:$0xff]  ;;  %v654_v25 = vld [vmem:[#allocation9 + $0x18] sm:$0xff] }
 0x1dc   : > { %1055 = vmatprep.subr.bf16.mxu0 %v1054_v20 }
 0x1dd   : > { %v414_v29 = vsub.f32 %v393_v21, %v410_v26  ;;  %620 = vst.msk [vmem:[#allocation2 + $0x8] sm:$0xff] %vm268_vm2, %v410_v26  ;;  %v415_v30 = vsub.f32 %v394_v22, %v411_v27  ;;  %621 = vst.msk [vmem:[#allocation2 + $0x10] sm:$0xff] %vm268_vm2, %v411_v27  ;;  %432 = vperm.xlu1 %1156, %v410_v26   ;;  %1057 = vmatpush3.bf16.msra.mxu0 %v1054_v20  ;;  %v757_v21 = vld [vmem:[#allocation9 + $0x20] sm:$0xff]  ;;  %v758_v22 = vld [vmem:[#allocation9 + $0x28] sm:$0xff] }
 0x1de   : > { %v408_v31 = vpop.xlane.xlu1 %407  ;;  %v1062_v24 = vpack.c.bf16 %v758_v22, %v757_v21  ;;  %v1058_v26 = vpack.c.bf16 %v654_v25, %v653_v23 }
 0x1df   : > { %v412_v32 = vmax.f32 %v395_v28, %v408_v31  ;;  %v419_v53 = vmul.f32 1.442695, %v414_v29  ;;  %v421_v57 = vmul.f32 1.442695, %v415_v30  ;;  %v487_v30 = vld [vmem:[#allocation4 + $0x8] sm:$0xff] }
 0x1e0   : > { %1063 = vmatprep.subr.bf16.mxu1 %v1062_v24  ;;  %1059 = vmatprep.subr.bf16.mxu0 %v1058_v26 }
 0x1e1   : > { %v416_v33 = vsub.f32 %v395_v28, %v412_v32  ;;  %622 = vst.msk [vmem:[#allocation2 + $0x18] sm:$0xff] %vm268_vm2, %v412_v32  ;;  %437 = vperm.xlu1 %1156, %v411_v27   ;;  %v759_v27 = vld [vmem:[#allocation9 + $0x30] sm:$0xff]  ;;  %v760_v28 = vld [vmem:[#allocation9 + $0x38] sm:$0xff]  ;;  %1061 = vmatpush3.bf16.msra.mxu0 %v1058_v26 }
 0x1e2   : > { %v1066_v29 = vpack.c.bf16 %v760_v28, %v759_v27 }
 0x1e3   : > { %v423_v56 = vmul.f32 1.442695, %v416_v33 }
 0x1e5   : > { %442 = vperm.xlu1 %1156, %v412_v32   ;;  %v486_v32 = vld [vmem:[#allocation4] sm:$0xff] }
 0x258   : > { %v428_v34 = vpop.permute.xlu0 %427 }
 0x259   : > { %v445_v35 = vsub.f32 %v373_v9, %v428_v34  ;;  %v460_v9 = vld [vmem:[#allocation3 + $0x18] sm:$0xff] }
 0x25b   : > { %v449_v36 = vmul.f32 1.442695, %v445_v35 }
 0x25c   : > { %v433_v37 = vpop.permute.xlu1 %432 }
 0x25d   : > { %1157 = vpow2.f32 %v449_v36  ;;  %v446_v38 = vsub.f32 %v1008_v8, %v433_v37 }
 0x25f   : > { %v451_v39 = vmul.f32 1.442695, %v446_v38 }
 0x260   : > { %v438_v40 = vpop.permute.xlu1 %437 }
 0x261   : > { %1159 = vpow2.f32 %v451_v39  ;;  %v447_v41 = vsub.f32 %v383_v12, %v438_v40  ;;  %v489_v40 = vld [vmem:[#allocation4 + $0x18] sm:$0xff] }
 0x263   : > { %v453_v42 = vmul.f32 1.442695, %v447_v41 }
 0x264   : > { %v443_v43 = vpop.permute.xlu1 %442 }
 0x265   : > { %1161 = vpow2.f32 %v453_v42  ;;  %v448_v44 = vsub.f32 %v1011_v11, %v443_v43  ;;  %v488_v42 = vld [vmem:[#allocation4 + $0x10] sm:$0xff] }
 0x267   : > { %v1158_v45 = vpop.eup %1157  ;;  %v455_v46 = vmul.f32 1.442695, %v448_v44 }
 0x268   : > { %1016 = vmatprep.mubr.msk.f32.mxu1 %vm396_vm3, %v1158_v45  ;;  %v465_v47 = vsel %vm396_vm3, %v1158_v45, 0.0 }
 0x269   : > { %1163 = vpow2.f32 %v455_v46  ;;  %466 = vadd.xlane.f32.xlu1 %v465_v47 }
 0x26a   : > { %1165 = vpow2.f32 %v419_v53 }
 0x26b   : > { %v1160_v48 = vpop.eup %1159  ;;  %1167 = vpow2.f32 %v417_v55 }
 0x26c   : > { %1017 = vmatmul.mubr.msk.f32.vlgmr.msra.gmra.mrb[0].mxu1 %vm396_vm3, %v1160_v48  ;;  %v468_v49 = vsel %vm396_vm3, %v1160_v48, 0.0  ;;  %1169 = vpow2.f32 %v423_v56 }
 0x26d   : > { %469 = vadd.xlane.f32.xlu0 %v468_v49  ;;  %1171 = vpow2.f32 %v421_v57  ;;  %1065 = vmatpush3.bf16.msra.mxu1 %v1062_v24 }
 0x26e   : > { %1067 = vmatprep.subr.bf16.mxu1 %v1066_v29 }
 0x26f   : > { %v1162_v50 = vpop.eup %1161 }
 0x270   : > { %1019 = vmatprep.mubr.msk.f32.mxu1 %vm396_vm3, %v1162_v50  ;;  %v471_v51 = vsel %vm396_vm3, %v1162_v50, 0.0 }
 0x271   : > { %472 = vadd.xlane.f32.xlu1 %v471_v51  ;;  %1069 = vmatpush3.bf16.msra.mxu1 %v1066_v29 }
 0x273   : > { %v1164_v52 = vpop.eup %1163 }
 0x274   : > { %1020 = vmatmul.mubr.msk.f32.gmra.mrb[2].mxu1 %vm396_vm3, %v1164_v52  ;;  %v474_v54 = vsel %vm396_vm3, %v1164_v52, 0.0  ;;  %v1166_v58 = vpop.eup %1165 }
 0x275   : > { %475 = vadd.xlane.f32.xlu1 %v474_v54  ;;  %v1168_v59 = vpop.eup %1167  ;;  %v462_v3 = vmul.f32 %v1166_v58, %v458_v1 }
 0x276   : > { %v1170_v60 = vpop.eup %1169  ;;  %v461_v63 = vmul.f32 %v1168_v59, %v457_v62 }
 0x277   : > { %v1172_v61 = vpop.eup %1171  ;;  %v464_v11 = vmul.f32 %v1170_v60, %v460_v9 }
 0x278   : > { %v463_v7 = vmul.f32 %v1172_v61, %v459_v5 }
 0x283   : > { %497 = vperm.xlu0 %1155, %v1166_v58  }
 0x286   : > { %492 = vperm.xlu1 %1156, %v1168_v59  }
 0x287   : > { %507 = vperm.xlu0 %1155, %v1170_v60  }
 0x28a   : > { %502 = vperm.xlu1 %1156, %v1172_v61  }
 0x2f6   : > { %v467_v0 = vpop.xlane.xlu1 %466 }
 0x2f7   : > { %v477_v2 = vadd.f32 %v467_v0, %v461_v63 }
 0x2f9   : > { %482 = vst.msk [vmem:[#allocation3] sm:$0xff] %vm268_vm2, %v477_v2 }
 0x2fa   : > { %v470_v4 = vpop.xlane.xlu0 %469 }
 0x2fb   : > { %v478_v6 = vadd.f32 %v470_v4, %v462_v3  ;;  %v969_v3 = vld [vmem:[%s1611_s3] ss:$0 sm:$0xff] }
 0x2fd   : > { %483 = vst.msk [vmem:[#allocation3 + $0x8] sm:$0xff] %vm268_vm2, %v478_v6 }
 0x2fe   : > { %v473_v8 = vpop.xlane.xlu1 %472 }
 0x2ff   : > { %v479_v10 = vadd.f32 %v473_v8, %v463_v7 }
 0x300   : > { %v635_v15 = vld [vmem:[#allocation3] sm:$0xff] }
 0x301   : > { %484 = vst.msk [vmem:[#allocation3 + $0x10] sm:$0xff] %vm268_vm2, %v479_v10 }
 0x302   : > { %v476_v12 = vpop.xlane.xlu1 %475  ;;  %v498_v31 = vpop.permute.xlu0 %497 }
 0x303   : > { %v480_v13 = vadd.f32 %v476_v12, %v464_v11  ;;  %v511_v34 = vmul.f32 %v498_v31, %v487_v30 }
 0x304   : > { %v636_v14 = vld [vmem:[#allocation3 + $0x8] sm:$0xff] }
 0x305   : > { %485 = vst.msk [vmem:[#allocation3 + $0x18] sm:$0xff] %vm268_vm2, %v480_v13  ;;  %644 = vperm.xlu1 %1156, %v636_v14  }
 0x306   : > { %v493_v33 = vpop.permute.xlu1 %492  ;;  %v508_v41 = vpop.permute.xlu0 %507 }
 0x307   : > { %v510_v35 = vmul.f32 %v493_v33, %v486_v32  ;;  %v513_v44 = vmul.f32 %v508_v41, %v489_v40 }
 0x308   : > { %v740_v17 = vld [vmem:[#allocation3 + $0x10] sm:$0xff] }
 0x309   : > { %639 = vperm.xlu1 %1156, %v635_v15  }
 0x30a   : > { %v503_v43 = vpop.permute.xlu1 %502 }
 0x30b   : > { %v512_v45 = vmul.f32 %v503_v43, %v488_v42 }
 0x30c   : > { %v741_v16 = vld [vmem:[#allocation3 + $0x18] sm:$0xff] }
 0x30d   : > { %749 = vperm.xlu0 %1155, %v741_v16   ;;  %744 = vperm.xlu1 %1156, %v740_v17  }
 0x33f   : > { %v1018_v36 = vpop.f32.mrb[0].mxu1 }
 0x340   : > { %v612_v37 = vadd.f32 %v1018_v36, %v511_v34  ;;  %v592_v38 = vpop.f32.mrb[1].mxu1 }
 0x341   : > { %v611_v39 = vadd.f32 %v592_v38, %v510_v35 }
 0x342   : > { %616 = vst.msk [vmem:[#allocation4 + $0x8] sm:$0xff] %vm277_vm0, %v612_v37 }
 0x343   : > { %615 = vst.msk [vmem:[#allocation4] sm:$0xff] %vm277_vm0, %v611_v39 }
 0x347   : > { %v1021_v46 = vpop.f32.mrb[2].mxu1 }
 0x348   : > { %v614_v47 = vadd.f32 %v1021_v46, %v513_v44  ;;  %v602_v48 = vpop.f32.mrb[3].mxu1 }
 0x349   : > { %v613_v49 = vadd.f32 %v602_v48, %v512_v45  ;;  %v634_v57 = vld [vmem:[#allocation4 + $0x8] sm:$0xff] }
 0x34a   : > { %618 = vst.msk [vmem:[#allocation4 + $0x18] sm:$0xff] %vm277_vm0, %v614_v47  ;;  %v633_v56 = vld [vmem:[#allocation4] sm:$0xff] }
 0x34b   : > { %617 = vst.msk [vmem:[#allocation4 + $0x10] sm:$0xff] %vm277_vm0, %v613_v49 }
 0x351   : > { %v739_v61 = vld [vmem:[#allocation4 + $0x18] sm:$0xff] }
 0x352   : > { %v738_v0 = vld [vmem:[#allocation4 + $0x10] sm:$0xff] }
 0x384   : > { %v645_v50 = vpop.permute.xlu1 %644 }
 0x385   : > { %1173 = vrcp.f32 %v645_v50 }
 0x388   : > { %v640_v51 = vpop.permute.xlu1 %639 }
 0x389   : > { %1175 = vrcp.f32 %v640_v51 }
 0x38c   : > { %v750_v52 = vpop.permute.xlu0 %749  ;;  %v745_v53 = vpop.permute.xlu1 %744 }
 0x38d   : > { %1177 = vrcp.f32 %v750_v52 }
 0x38e   : > { %1179 = vrcp.f32 %v745_v53 }
 0x38f   : > { %v1174_v54 = vpop.eup %1173 }
 0x390   : > { %v650_v59 = vmul.f32 %v1174_v54, %v634_v57 }
 0x393   : > { %v1176_v55 = vpop.eup %1175 }
 0x394   : > { %v648_v58 = vmul.f32 %v1176_v55, %v633_v56 }
 0x396   : > { %1030 = vmatprep.mubr.msk.f32.mxu0 %vm277_vm0, %v648_v58 }
 0x397   : > { %v1178_v60 = vpop.eup %1177  ;;  %1031 = vmatmul.mubr.msk.f32.vlgmr.msra.gmra.mrb[4].mxu0 %vm277_vm0, %v650_v59 }
 0x398   : > { %v1180_v62 = vpop.eup %1179  ;;  %v755_v63 = vmul.f32 %v1178_v60, %v739_v61 }
 0x399   : > { %v753_v1 = vmul.f32 %v1180_v62, %v738_v0 }
 0x39b   : > { %1041 = vmatprep.mubr.msk.f32.mxu1 %vm277_vm0, %v753_v1 }
 0x39c   : > { %1042 = vmatmul.mubr.msk.f32.vlgmr.msra.gmra.mrb[4].mxu1 %vm277_vm0, %v755_v63 }
 0x46a   : > { %v1032_v2 = vpop.f32.mrb[4].mxu0 }
 0x46b   : > { %v727_v4 = vpop.f32.mrb[5].mxu0  ;;  %v737_v5 = vadd.f32 %v1032_v2, %v969_v3 }
 0x46c   : > { %v736_v6 = vadd.f32 %v969_v3, %v727_v4 }
 0x46f   : > { %v1043_v7 = vpop.f32.mrb[4].mxu1 }
 0x470   : > { %v843_v8 = vadd.f32 %v1043_v7, %v737_v5  ;;  %v833_v9 = vpop.f32.mrb[5].mxu1 }
 0x471   : > { %v842_v10 = vadd.f32 %v833_v9, %v736_v6 }
 0x472   : > { %846 = vst.msk [vmem:[%s263_s30 + $0x8] sm:$0x3] %vm845_vm4, %v843_v8 }
 0x473   : > { %844 = vst.msk [vmem:[%s263_s30] sm:$0xff] %vm277_vm0, %v842_v10 }
 0x474 PF: > { %s18_s20 = sadd.s32 1, %s1321_s20   ;;  %s1625_s15 = smov %s1305_s16 }
 0x475   : > { %p15_p9 = scmp.ge.s32.totalorder %s18_s20, 4   ;;  %s1626_s16 = smov %s1309_s17 }
 0x476   : > { %s1627_s17 = smov %s1478_s25  ;;  %s1628_s18 = smov %s1317_s19 }
 0x477   : > { %s1629_s19 = smov %s1631_s10  ;;  %17 = sbr.rel (!%p15_p9) target bundleno = 5 (0x5), region = 93 }
 0x47e   :  { %868 = vsyncpa [#allocation6], 1 }
 0x47f   :  { %870 = vsyncpa [#allocation6 + $0x1], 1 }
 0x480   :  { %871 = vsyncpa [#allocation8], 1 }

</bundles_post_ra>
